<compile_context>
chip_gen: v6e
topology: v6e:2x2x1
jax: 0.10.0
libtpu: 0.0.40
codegen_flags: <defaults>
</compile_context>

<pallas_src>
import math
import functools

import numpy as np
import jax
import jax.numpy as jnp
from jax.experimental import pallas as pl
from jax.experimental.pallas import tpu as pltpu


PARAM_ORDER = ("w1", "b1", "w2", "b2",
               "wq", "bq", "wk", "bk", "wv", "bv",
               "wkp", "bkp", "wqp", "bqp")

_F32_SUBLANE = 8


def policy_kernel(x_ref, sumn_ref, r_ref, gk_ref, gkp_ref, av_ref,
                  w1_ref, b1_ref, w2_ref, b2_ref,
                  wq_ref, bq_ref, wk_ref, bk_ref, wv_ref, bv_ref,
                  wkp_ref, bkp_ref, wqp_ref, bqp_ref,
                  prob_ref,
                  *, bb, nm1, n_nodes, n_agent, hid_chnl, clipping):
    f32 = jnp.float32
    bm = bb * nm1

    def bcast_rows(v):
        """Replicate each of the bb per-batch rows nm1 times -> (bm, X)."""
        if nm1 % _F32_SUBLANE == 0:
            # nm1 matches the f32 sublane tile: free sublane broadcast + no-op merge
            return jnp.broadcast_to(v[:, None, :], (bb, nm1, v.shape[-1])
                                    ).reshape(bm, v.shape[-1])
        return jnp.dot(r_ref[...], v, preferred_element_type=f32)   # fallback

    # ---- node embedding MLP over all (bm + bb) rows at once -----------------
    # rows [0:bm]   = non-depot nodes (batch-contiguous, nm1 rows per graph)
    # rows [bm:]    = depot node of each graph
    x = x_ref[...]                                                    # (bm+bb, in_chnl)
    h1 = jnp.maximum(
        jnp.dot(x, w1_ref[...], preferred_element_type=f32) + b1_ref[...], 0.0)
    nodes_h = jnp.dot(h1, w2_ref[...], preferred_element_type=f32) + b2_ref[...]

    f = nodes_h[0:bm, :]                    # (bm, hid)   tile-aligned static slice
    depot = nodes_h[bm:bm + bb, :]          # (bb, hid)

    sum_n = sumn_ref[...]                   # (bb, bm) 0/1 per-graph segment sum
    g_h = (jnp.dot(sum_n, f, preferred_element_type=f32) + depot) * (1.0 / n_nodes)

    # ---- Agentembedding ('MH'), all agents fused into wide matmuls ----------
    # f_c = [g_h | depot] @ wq  ==  g_h @ wq[:hid] + depot @ wq[hid:]
    q_all = (jnp.dot(g_h, wq_ref[0:hid_chnl, :], preferred_element_type=f32)
             + jnp.dot(depot, wq_ref[hid_chnl:, :], preferred_element_type=f32)
             + bq_ref[...])                                           # (bb, A*K)
    k_all = jnp.dot(f, wk_ref[...], preferred_element_type=f32) + bk_ref[...]   # scaled
    v_all = jnp.dot(f, wv_ref[...], preferred_element_type=f32) + bv_ref[...]

    # u[row, a] = k_a(row) . q_a(batch(row)) / sqrt(K)   (scale folded into wk/bk)
    u = jnp.dot(k_all * bcast_rows(q_all), gk_ref[...],
                preferred_element_type=f32)                           # (bm, A)

    # segmented softmax over each graph's nm1 node rows; a single global column
    # max is a valid (and numerically safe) shift constant for every segment.
    gmax = jnp.max(u, axis=0, keepdims=True)                          # (1, A)
    e = jnp.exp(u - gmax)                                             # (bm, A)
    gsum = jnp.dot(sum_n, e, preferred_element_type=f32)              # (bb, A)
    attn = e * bcast_rows(pl.reciprocal(gsum, approx=True))           # (bm, A)

    # agent_emb[b, a*V + v] = sum_n attn[b, n, a] * v_a[b, n, v]
    agent_emb = jnp.dot(sum_n,
                        v_all * jnp.dot(attn, av_ref[...], preferred_element_type=f32),
                        preferred_element_type=f32)                   # (bb, A*V)

    # ---- Policy head ---------------------------------------------------------
    k_pol = jnp.dot(f, wkp_ref[...], preferred_element_type=f32) + bkp_ref[...]      # scaled
    q_pol = jnp.dot(agent_emb, wqp_ref[...], preferred_element_type=f32) + bqp_ref[...]  # (bb, A*Kp)

    u_pol = jnp.dot(bcast_rows(q_pol) * jnp.tile(k_pol, (1, n_agent)),
                    gkp_ref[...], preferred_element_type=f32)         # (bm, A)

    # lane-dense (A, bm) result; softmax over the agent axis (torch dim=-2)
    imp = clipping * jnp.tanh(u_pol.T)                                # (A, bm)
    m = jnp.max(imp, axis=0, keepdims=True)
    ee = jnp.exp(imp - m)
    prob_ref[...] = ee / jnp.sum(ee, axis=0, keepdims=True)           # exact normalization


def _structure_mats(bb, nm1, n_agent, key_size_embd, key_size_policy, val_size):
    bm = bb * nm1
    sum_n = np.zeros((bb, bm), np.float32)
    rmat = np.zeros((bm, bb), np.float32)
    for b in range(bb):
        sum_n[b, b * nm1:(b + 1) * nm1] = 1.0
        rmat[b * nm1:(b + 1) * nm1, b] = 1.0
    gk = np.kron(np.eye(n_agent), np.ones((key_size_embd, 1))).astype(np.float32)    # (A*K, A)
    gkp = np.kron(np.eye(n_agent), np.ones((key_size_policy, 1))).astype(np.float32)  # (A*Kp, A)
    av = np.kron(np.eye(n_agent), np.ones((1, val_size))).astype(np.float32)          # (A, A*V)
    return (jnp.asarray(sum_n), jnp.asarray(rmat), jnp.asarray(gk),
            jnp.asarray(gkp), jnp.asarray(av))


def _pack_params(p, *, n_agent, key_size_embd, key_size_policy, val_size, hid_chnl):
    """Fuse per-agent weights along the lane axis, block-diagonalize the policy
    query weight, and fold the 1/sqrt(key_size) scales into the k-side weights."""
    ak = n_agent * key_size_embd
    av = n_agent * val_size
    sk = np.float32(1.0 / math.sqrt(key_size_embd))
    skp = np.float32(1.0 / math.sqrt(key_size_policy))
    return {
        "w1": p["w1"], "b1": p["b1"], "w2": p["w2"], "b2": p["b2"],
        "wq": jnp.transpose(p["wq"], (1, 0, 2)).reshape(2 * hid_chnl, ak),
        "bq": p["bq"].reshape(1, ak),
        "wk": jnp.transpose(p["wk"], (1, 0, 2)).reshape(hid_chnl, ak) * sk,
        "bk": p["bk"].reshape(1, ak) * sk,
        "wv": jnp.transpose(p["wv"], (1, 0, 2)).reshape(hid_chnl, av),
        "bv": p["bv"].reshape(1, av),
        "wkp": p["wkp"] * skp,
        "bkp": p["bkp"] * skp,
        "wqp": jnp.kron(jnp.eye(n_agent, dtype=jnp.float32), p["wqp"]),   # (A*V, A*Kp)
        "bqp": jnp.tile(p["bqp"], (1, n_agent)),                          # (1, A*Kp)
    }


def policy_forward(x, params, *, clipping, batch_block=16):
    B, n_nodes, in_chnl = x.shape
    nm1 = n_nodes - 1

    n_agent, two_hid, key_size_embd = params["wq"].shape
    hid_chnl = two_hid // 2
    val_size = params["wv"].shape[2]
    key_size_policy = params["wkp"].shape[1]

    # batch_block=B minimizes step count (best on v5e/v6e: 1 TC); keeping 2 even
    # steps (e.g. 16 for B=32) feeds both v7x TensorCores via the parallel axis.
    bb = min(batch_block, B)
    assert B % bb == 0, "batch size must be divisible by the batch block"
    n_steps = B // bb
    bm = bb * nm1
    rows = bm + bb

    packed = _pack_params(params, n_agent=n_agent, key_size_embd=key_size_embd,
                          key_size_policy=key_size_policy, val_size=val_size,
                          hid_chnl=hid_chnl)
    consts = _structure_mats(bb, nm1, n_agent, key_size_embd, key_size_policy, val_size)

    # Host-side layout: per grid block put the bm non-depot node rows first
    # (batch-contiguous) and the bb depot rows last -> kernel gets free slices.
    x4 = x.reshape(n_steps, bb, n_nodes, in_chnl)
    nd = x4[:, :, 1:, :].reshape(n_steps, bm, in_chnl)
    dep = x4[:, :, 0, :]
    x_arr = jnp.concatenate([nd, dep], axis=1).reshape(n_steps * rows, in_chnl)

    kernel = functools.partial(
        policy_kernel, bb=bb, nm1=nm1, n_nodes=n_nodes, n_agent=n_agent,
        hid_chnl=hid_chnl, clipping=clipping)

    def full(a):
        return pl.BlockSpec(a.shape, lambda b: (0, 0))

    in_specs = [pl.BlockSpec((rows, in_chnl), lambda b: (b, 0))]
    in_specs += [full(a) for a in consts]
    in_specs += [full(packed[k]) for k in PARAM_ORDER]

    out = pl.pallas_call(
        kernel,
        out_shape=jax.ShapeDtypeStruct((n_agent, B * nm1), jnp.float32),
        grid=(n_steps,),
        in_specs=in_specs,
        out_specs=pl.BlockSpec((n_agent, bm), lambda b: (0, b)),
        compiler_params=pltpu.CompilerParams(dimension_semantics=("parallel",)),
    )(x_arr, *consts, *[packed[k] for k in PARAM_ORDER])

    # (n_agent, B*(N-1)) lane-dense kernel layout -> (B, n_agent, N-1)
    return jnp.transpose(out.reshape(n_agent, B, nm1), (1, 0, 2))


def reference_forward(x, p, *, n_agent, key_size_embd, key_size_policy, clipping):
    """Pure-JAX reference mirroring the PyTorch forward semantics."""
    h1 = jax.nn.relu(x @ p["w1"] + p["b1"][0])
    nodes_h = h1 @ p["w2"] + p["b2"][0]                      # (B, N, hid)
    g_h = nodes_h.mean(axis=1, keepdims=True)                # (B, 1, hid)
    f_c = jnp.concatenate([g_h, nodes_h[:, 0:1, :]], axis=-1)
    f = nodes_h[:, 1:, :]
    embs = []
    for i in range(n_agent):
        q = f_c @ p["wq"][i] + p["bq"][i]
        k = f @ p["wk"][i] + p["bk"][i]
        v = f @ p["wv"][i] + p["bv"][i]
        u = jnp.einsum("bnk,bmk->bnm", k, q) / math.sqrt(key_size_embd)   # (B, N-1, 1)
        u_ = jnp.swapaxes(jax.nn.softmax(u, axis=-2), -1, -2)             # (B, 1, N-1)
        embs.append(u_ @ v)                                               # (B, 1, V)
    agent_emb = jnp.concatenate(embs, axis=1)                             # (B, A, V)
    k_pol = f @ p["wkp"] + p["bkp"][0]
    q_pol = agent_emb @ p["wqp"] + p["bqp"][0]
    u_pol = jnp.einsum("bak,bnk->ban", q_pol, k_pol) / math.sqrt(key_size_policy)
    imp = clipping * jnp.tanh(u_pol)
    return jax.nn.softmax(imp, axis=-2)


def init_params(key, *, in_chnl, hid_chnl, n_agent, key_size_embd,
                key_size_policy, val_size):
    ks = jax.random.split(key, 14)
    s = 0.1

    def rnd(k, shape):
        return (s * jax.random.normal(k, shape)).astype(jnp.float32)

    return {
        # node-embedding MLP (in_chnl -> hid -> hid)
        "w1": rnd(ks[0], (in_chnl, hid_chnl)),
        "b1": rnd(ks[1], (1, hid_chnl)),
        "w2": rnd(ks[2], (hid_chnl, hid_chnl)),
        "b2": rnd(ks[3], (1, hid_chnl)),
        # per-agent Agentembedding ('MH': one set of weights per agent)
        "wq": rnd(ks[4], (n_agent, 2 * hid_chnl, key_size_embd)),
        "bq": rnd(ks[5], (n_agent, 1, key_size_embd)),
        "wk": rnd(ks[6], (n_agent, hid_chnl, key_size_embd)),
        "bk": rnd(ks[7], (n_agent, 1, key_size_embd)),
        "wv": rnd(ks[8], (n_agent, hid_chnl, val_size)),
        "bv": rnd(ks[9], (n_agent, 1, val_size)),
        # Policy head
        "wkp": rnd(ks[10], (hid_chnl, key_size_policy)),
        "bkp": rnd(ks[11], (1, key_size_policy)),
        "wqp": rnd(ks[12], (val_size, key_size_policy)),
        "bqp": rnd(ks[13], (1, key_size_policy)),
    }


if __name__ == "__main__":
    # depot + 8 customers per graph; 32 graphs, blocked 16 per grid step
    n_batch = 32
    n_nodes = 9
    in_chnl = 4
    hid_chnl = 32
    n_agent = 3
    key_size_embd = 16
    key_size_policy = 16
    val_size = 16
    clipping = 10.0

    key = jax.random.PRNGKey(0)
    k_x, k_p = jax.random.split(key)
    x = jax.random.normal(k_x, (n_batch, n_nodes, in_chnl), dtype=jnp.float32)
    params = init_params(k_p, in_chnl=in_chnl, hid_chnl=hid_chnl, n_agent=n_agent,
                         key_size_embd=key_size_embd, key_size_policy=key_size_policy,
                         val_size=val_size)

    prob = policy_forward(x, params, clipping=clipping, batch_block=16)
    prob = jax.block_until_ready(prob)

    ref = reference_forward(x, params, n_agent=n_agent, key_size_embd=key_size_embd,
                            key_size_policy=key_size_policy, clipping=clipping)
    assert prob.shape == (n_batch, n_agent, n_nodes - 1)
    max_err = float(jnp.max(jnp.abs(prob - ref)))
    # approx reciprocal (EUP) in the attention-softmax denominator -> relaxed tol
    assert jnp.allclose(prob, ref, atol=2e-3, rtol=2e-3), f"max abs err {max_err}"

    print("KERNEL_OK")
</pallas_src>

<mosaic_0001>
module attributes {stable_mosaic.version = 11 : i64} {
  func.func @policy_kernel(%arg0: i32, %arg1: memref<144x4xf32, #tpu.memory_space<vmem>>, %arg2: memref<16x128xf32, #tpu.memory_space<vmem>>, %arg3: memref<128x16xf32, #tpu.memory_space<vmem>>, %arg4: memref<48x3xf32, #tpu.memory_space<vmem>>, %arg5: memref<48x3xf32, #tpu.memory_space<vmem>>, %arg6: memref<3x48xf32, #tpu.memory_space<vmem>>, %arg7: memref<4x32xf32, #tpu.memory_space<vmem>>, %arg8: memref<1x32xf32, #tpu.memory_space<vmem>>, %arg9: memref<32x32xf32, #tpu.memory_space<vmem>>, %arg10: memref<1x32xf32, #tpu.memory_space<vmem>>, %arg11: memref<64x48xf32, #tpu.memory_space<vmem>>, %arg12: memref<1x48xf32, #tpu.memory_space<vmem>>, %arg13: memref<32x48xf32, #tpu.memory_space<vmem>>, %arg14: memref<1x48xf32, #tpu.memory_space<vmem>>, %arg15: memref<32x48xf32, #tpu.memory_space<vmem>>, %arg16: memref<1x48xf32, #tpu.memory_space<vmem>>, %arg17: memref<32x16xf32, #tpu.memory_space<vmem>>, %arg18: memref<1x16xf32, #tpu.memory_space<vmem>>, %arg19: memref<48x48xf32, #tpu.memory_space<vmem>>, %arg20: memref<1x48xf32, #tpu.memory_space<vmem>>, %arg21: memref<3x128xf32, #tpu.memory_space<vmem>>) attributes {dimension_semantics = [#tpu.dimension_semantics<parallel>], iteration_bounds = array<i64: 2>, scalar_prefetch = 0 : i64, scratch_operands = 0 : i64, tpu.core_type = #tpu.core_type<tc>, window_params = [{transform_indices = @transform_0, window_bounds = array<i64: 144, 4>}, {pipeline_mode = #tpu.pipeline_mode<synchronous>, transform_indices = @transform_1, window_bounds = array<i64: 16, 128>}, {pipeline_mode = #tpu.pipeline_mode<synchronous>, transform_indices = @transform_2, window_bounds = array<i64: 128, 16>}, {pipeline_mode = #tpu.pipeline_mode<synchronous>, transform_indices = @transform_3, window_bounds = array<i64: 48, 3>}, {pipeline_mode = #tpu.pipeline_mode<synchronous>, transform_indices = @transform_4, window_bounds = array<i64: 48, 3>}, {pipeline_mode = #tpu.pipeline_mode<synchronous>, transform_indices = @transform_5, window_bounds = array<i64: 3, 48>}, {pipeline_mode = #tpu.pipeline_mode<synchronous>, transform_indices = @transform_6, window_bounds = array<i64: 4, 32>}, {pipeline_mode = #tpu.pipeline_mode<synchronous>, transform_indices = @transform_7, window_bounds = array<i64: 1, 32>}, {pipeline_mode = #tpu.pipeline_mode<synchronous>, transform_indices = @transform_8, window_bounds = array<i64: 32, 32>}, {pipeline_mode = #tpu.pipeline_mode<synchronous>, transform_indices = @transform_9, window_bounds = array<i64: 1, 32>}, {pipeline_mode = #tpu.pipeline_mode<synchronous>, transform_indices = @transform_10, window_bounds = array<i64: 64, 48>}, {pipeline_mode = #tpu.pipeline_mode<synchronous>, transform_indices = @transform_11, window_bounds = array<i64: 1, 48>}, {pipeline_mode = #tpu.pipeline_mode<synchronous>, transform_indices = @transform_12, window_bounds = array<i64: 32, 48>}, {pipeline_mode = #tpu.pipeline_mode<synchronous>, transform_indices = @transform_13, window_bounds = array<i64: 1, 48>}, {pipeline_mode = #tpu.pipeline_mode<synchronous>, transform_indices = @transform_14, window_bounds = array<i64: 32, 48>}, {pipeline_mode = #tpu.pipeline_mode<synchronous>, transform_indices = @transform_15, window_bounds = array<i64: 1, 48>}, {pipeline_mode = #tpu.pipeline_mode<synchronous>, transform_indices = @transform_16, window_bounds = array<i64: 32, 16>}, {pipeline_mode = #tpu.pipeline_mode<synchronous>, transform_indices = @transform_17, window_bounds = array<i64: 1, 16>}, {pipeline_mode = #tpu.pipeline_mode<synchronous>, transform_indices = @transform_18, window_bounds = array<i64: 48, 48>}, {pipeline_mode = #tpu.pipeline_mode<synchronous>, transform_indices = @transform_19, window_bounds = array<i64: 1, 48>}, {transform_indices = @transform_20, window_bounds = array<i64: 3, 128>}]} {
    %c0 = arith.constant 0 : index
    %c0_0 = arith.constant 0 : index
    %0 = vector.load %arg1[%c0, %c0_0] : memref<144x4xf32, #tpu.memory_space<vmem>>, vector<144x4xf32>
    %c0_1 = arith.constant 0 : index
    %c0_2 = arith.constant 0 : index
    %1 = vector.load %arg7[%c0_1, %c0_2] : memref<4x32xf32, #tpu.memory_space<vmem>>, vector<4x32xf32>
    %cst = arith.constant dense<0.000000e+00> : vector<144x32xf32>
    %2 = tpu.matmul %0, %1, %cst {dimension_numbers = #tpu.dot_dimension_numbers<[1], [0], [0], [1], [0, 0, 1, 1], [], []>} : vector<144x4xf32>, vector<4x32xf32>, vector<144x32xf32> -> vector<144x32xf32>
    %c0_3 = arith.constant 0 : index
    %c0_4 = arith.constant 0 : index
    %3 = vector.load %arg8[%c0_3, %c0_4] : memref<1x32xf32, #tpu.memory_space<vmem>>, vector<1x32xf32>
    %4 = vector.broadcast %3 : vector<1x32xf32> to vector<144x32xf32>
    %5 = arith.addf %2, %4 : vector<144x32xf32>
    %cst_5 = arith.constant 0.000000e+00 : f32
    %6 = vector.broadcast %cst_5 : f32 to vector<144x32xf32>
    %7 = arith.maximumf %5, %6 : vector<144x32xf32>
    %c0_6 = arith.constant 0 : index
    %c0_7 = arith.constant 0 : index
    %8 = vector.load %arg9[%c0_6, %c0_7] : memref<32x32xf32, #tpu.memory_space<vmem>>, vector<32x32xf32>
    %cst_8 = arith.constant dense<0.000000e+00> : vector<144x32xf32>
    %9 = tpu.matmul %7, %8, %cst_8 {dimension_numbers = #tpu.dot_dimension_numbers<[1], [0], [0], [1], [0, 0, 1, 1], [], []>} : vector<144x32xf32>, vector<32x32xf32>, vector<144x32xf32> -> vector<144x32xf32>
    %c0_9 = arith.constant 0 : index
    %c0_10 = arith.constant 0 : index
    %10 = vector.load %arg10[%c0_9, %c0_10] : memref<1x32xf32, #tpu.memory_space<vmem>>, vector<1x32xf32>
    %11 = vector.broadcast %10 : vector<1x32xf32> to vector<144x32xf32>
    %12 = arith.addf %9, %11 : vector<144x32xf32>
    %13 = vector.extract_strided_slice %12 {offsets = [0, 0], sizes = [128, 32], strides = [1, 1]} : vector<144x32xf32> to vector<128x32xf32>
    %14 = vector.extract_strided_slice %12 {offsets = [128, 0], sizes = [16, 32], strides = [1, 1]} : vector<144x32xf32> to vector<16x32xf32>
    %c0_11 = arith.constant 0 : index
    %c0_12 = arith.constant 0 : index
    %15 = vector.load %arg2[%c0_11, %c0_12] : memref<16x128xf32, #tpu.memory_space<vmem>>, vector<16x128xf32>
    %cst_13 = arith.constant dense<0.000000e+00> : vector<16x32xf32>
    %16 = tpu.matmul %15, %13, %cst_13 {dimension_numbers = #tpu.dot_dimension_numbers<[1], [0], [0], [1], [0, 0, 1, 1], [], []>} : vector<16x128xf32>, vector<128x32xf32>, vector<16x32xf32> -> vector<16x32xf32>
    %17 = arith.addf %16, %14 : vector<16x32xf32>
    %cst_14 = arith.constant 0.111111112 : f32
    %18 = vector.broadcast %cst_14 : f32 to vector<16x32xf32>
    %19 = arith.mulf %17, %18 : vector<16x32xf32>
    %c0_15 = arith.constant 0 : index
    %c0_16 = arith.constant 0 : index
    %20 = vector.load %arg11[%c0_15, %c0_16] : memref<64x48xf32, #tpu.memory_space<vmem>>, vector<32x48xf32>
    %cst_17 = arith.constant dense<0.000000e+00> : vector<16x48xf32>
    %21 = tpu.matmul %19, %20, %cst_17 {dimension_numbers = #tpu.dot_dimension_numbers<[1], [0], [0], [1], [0, 0, 1, 1], [], []>} : vector<16x32xf32>, vector<32x48xf32>, vector<16x48xf32> -> vector<16x48xf32>
    %c32 = arith.constant 32 : index
    %c0_18 = arith.constant 0 : index
    %22 = vector.load %arg11[%c32, %c0_18] : memref<64x48xf32, #tpu.memory_space<vmem>>, vector<32x48xf32>
    %cst_19 = arith.constant dense<0.000000e+00> : vector<16x48xf32>
    %23 = tpu.matmul %14, %22, %cst_19 {dimension_numbers = #tpu.dot_dimension_numbers<[1], [0], [0], [1], [0, 0, 1, 1], [], []>} : vector<16x32xf32>, vector<32x48xf32>, vector<16x48xf32> -> vector<16x48xf32>
    %24 = arith.addf %21, %23 : vector<16x48xf32>
    %c0_20 = arith.constant 0 : index
    %c0_21 = arith.constant 0 : index
    %25 = vector.load %arg12[%c0_20, %c0_21] : memref<1x48xf32, #tpu.memory_space<vmem>>, vector<1x48xf32>
    %26 = vector.broadcast %25 : vector<1x48xf32> to vector<16x48xf32>
    %27 = arith.addf %24, %26 : vector<16x48xf32>
    %c0_22 = arith.constant 0 : index
    %c0_23 = arith.constant 0 : index
    %28 = vector.load %arg13[%c0_22, %c0_23] : memref<32x48xf32, #tpu.memory_space<vmem>>, vector<32x48xf32>
    %cst_24 = arith.constant dense<0.000000e+00> : vector<128x48xf32>
    %29 = tpu.matmul %13, %28, %cst_24 {dimension_numbers = #tpu.dot_dimension_numbers<[1], [0], [0], [1], [0, 0, 1, 1], [], []>} : vector<128x32xf32>, vector<32x48xf32>, vector<128x48xf32> -> vector<128x48xf32>
    %c0_25 = arith.constant 0 : index
    %c0_26 = arith.constant 0 : index
    %30 = vector.load %arg14[%c0_25, %c0_26] : memref<1x48xf32, #tpu.memory_space<vmem>>, vector<1x48xf32>
    %31 = vector.broadcast %30 : vector<1x48xf32> to vector<128x48xf32>
    %32 = arith.addf %29, %31 : vector<128x48xf32>
    %c0_27 = arith.constant 0 : index
    %c0_28 = arith.constant 0 : index
    %33 = vector.load %arg15[%c0_27, %c0_28] : memref<32x48xf32, #tpu.memory_space<vmem>>, vector<32x48xf32>
    %cst_29 = arith.constant dense<0.000000e+00> : vector<128x48xf32>
    %34 = tpu.matmul %13, %33, %cst_29 {dimension_numbers = #tpu.dot_dimension_numbers<[1], [0], [0], [1], [0, 0, 1, 1], [], []>} : vector<128x32xf32>, vector<32x48xf32>, vector<128x48xf32> -> vector<128x48xf32>
    %c0_30 = arith.constant 0 : index
    %c0_31 = arith.constant 0 : index
    %35 = vector.load %arg16[%c0_30, %c0_31] : memref<1x48xf32, #tpu.memory_space<vmem>>, vector<1x48xf32>
    %36 = vector.broadcast %35 : vector<1x48xf32> to vector<128x48xf32>
    %37 = arith.addf %34, %36 : vector<128x48xf32>
    %38 = vector.shape_cast %27 : vector<16x48xf32> to vector<16x1x48xf32>
    %39 = vector.shape_cast %38 : vector<16x1x48xf32> to vector<16x1x48xf32>
    %40 = vector.broadcast %39 : vector<16x1x48xf32> to vector<16x8x48xf32>
    %41 = vector.shape_cast %40 : vector<16x8x48xf32> to vector<128x48xf32>
    %42 = arith.mulf %32, %41 : vector<128x48xf32>
    %c0_32 = arith.constant 0 : index
    %c0_33 = arith.constant 0 : index
    %43 = vector.load %arg4[%c0_32, %c0_33] : memref<48x3xf32, #tpu.memory_space<vmem>>, vector<48x3xf32>
    %cst_34 = arith.constant dense<0.000000e+00> : vector<128x3xf32>
    %44 = tpu.matmul %42, %43, %cst_34 {dimension_numbers = #tpu.dot_dimension_numbers<[1], [0], [0], [1], [0, 0, 1, 1], [], []>} : vector<128x48xf32>, vector<48x3xf32>, vector<128x3xf32> -> vector<128x3xf32>
    %cst_35 = arith.constant dense<0xFF800000> : vector<3xf32>
    %45 = vector.multi_reduction <maximumf>, %44, %cst_35 [0] : vector<128x3xf32> to vector<3xf32>
    %46 = vector.shape_cast %45 : vector<3xf32> to vector<1x3xf32>
    %47 = vector.broadcast %46 : vector<1x3xf32> to vector<128x3xf32>
    %48 = arith.subf %44, %47 : vector<128x3xf32>
    %49 = math.exp %48 : vector<128x3xf32>
    %cst_36 = arith.constant dense<0.000000e+00> : vector<16x3xf32>
    %50 = tpu.matmul %15, %49, %cst_36 {dimension_numbers = #tpu.dot_dimension_numbers<[1], [0], [0], [1], [0, 0, 1, 1], [], []>} : vector<16x128xf32>, vector<128x3xf32>, vector<16x3xf32> -> vector<16x3xf32>
    %51 = tpu.reciprocal %50 {approx = true} : vector<16x3xf32> -> vector<16x3xf32>
    %52 = vector.shape_cast %51 : vector<16x3xf32> to vector<16x1x3xf32>
    %53 = vector.shape_cast %52 : vector<16x1x3xf32> to vector<16x1x3xf32>
    %54 = vector.broadcast %53 : vector<16x1x3xf32> to vector<16x8x3xf32>
    %55 = vector.shape_cast %54 : vector<16x8x3xf32> to vector<128x3xf32>
    %56 = arith.mulf %49, %55 : vector<128x3xf32>
    %c0_37 = arith.constant 0 : index
    %c0_38 = arith.constant 0 : index
    %57 = vector.load %arg6[%c0_37, %c0_38] : memref<3x48xf32, #tpu.memory_space<vmem>>, vector<3x48xf32>
    %cst_39 = arith.constant dense<0.000000e+00> : vector<128x48xf32>
    %58 = tpu.matmul %56, %57, %cst_39 {dimension_numbers = #tpu.dot_dimension_numbers<[1], [0], [0], [1], [0, 0, 1, 1], [], []>} : vector<128x3xf32>, vector<3x48xf32>, vector<128x48xf32> -> vector<128x48xf32>
    %59 = arith.mulf %37, %58 : vector<128x48xf32>
    %cst_40 = arith.constant dense<0.000000e+00> : vector<16x48xf32>
    %60 = tpu.matmul %15, %59, %cst_40 {dimension_numbers = #tpu.dot_dimension_numbers<[1], [0], [0], [1], [0, 0, 1, 1], [], []>} : vector<16x128xf32>, vector<128x48xf32>, vector<16x48xf32> -> vector<16x48xf32>
    %c0_41 = arith.constant 0 : index
    %c0_42 = arith.constant 0 : index
    %61 = vector.load %arg17[%c0_41, %c0_42] : memref<32x16xf32, #tpu.memory_space<vmem>>, vector<32x16xf32>
    %cst_43 = arith.constant dense<0.000000e+00> : vector<128x16xf32>
    %62 = tpu.matmul %13, %61, %cst_43 {dimension_numbers = #tpu.dot_dimension_numbers<[1], [0], [0], [1], [0, 0, 1, 1], [], []>} : vector<128x32xf32>, vector<32x16xf32>, vector<128x16xf32> -> vector<128x16xf32>
    %c0_44 = arith.constant 0 : index
    %c0_45 = arith.constant 0 : index
    %63 = vector.load %arg18[%c0_44, %c0_45] : memref<1x16xf32, #tpu.memory_space<vmem>>, vector<1x16xf32>
    %64 = vector.broadcast %63 : vector<1x16xf32> to vector<128x16xf32>
    %65 = arith.addf %62, %64 : vector<128x16xf32>
    %c0_46 = arith.constant 0 : index
    %c0_47 = arith.constant 0 : index
    %66 = vector.load %arg19[%c0_46, %c0_47] : memref<48x48xf32, #tpu.memory_space<vmem>>, vector<48x48xf32>
    %cst_48 = arith.constant dense<0.000000e+00> : vector<16x48xf32>
    %67 = tpu.matmul %60, %66, %cst_48 {dimension_numbers = #tpu.dot_dimension_numbers<[1], [0], [0], [1], [0, 0, 1, 1], [], []>} : vector<16x48xf32>, vector<48x48xf32>, vector<16x48xf32> -> vector<16x48xf32>
    %c0_49 = arith.constant 0 : index
    %c0_50 = arith.constant 0 : index
    %68 = vector.load %arg20[%c0_49, %c0_50] : memref<1x48xf32, #tpu.memory_space<vmem>>, vector<1x48xf32>
    %69 = vector.broadcast %68 : vector<1x48xf32> to vector<16x48xf32>
    %70 = arith.addf %67, %69 : vector<16x48xf32>
    %71 = vector.shape_cast %70 : vector<16x48xf32> to vector<16x1x48xf32>
    %72 = vector.shape_cast %71 : vector<16x1x48xf32> to vector<16x1x48xf32>
    %73 = vector.broadcast %72 : vector<16x1x48xf32> to vector<16x8x48xf32>
    %74 = vector.shape_cast %73 : vector<16x8x48xf32> to vector<128x48xf32>
    %75 = tpu.concatenate %65, %65, %65 in 1 : vector<128x16xf32>, vector<128x16xf32>, vector<128x16xf32> -> vector<128x48xf32>
    %76 = arith.mulf %74, %75 : vector<128x48xf32>
    %c0_51 = arith.constant 0 : index
    %c0_52 = arith.constant 0 : index
    %77 = vector.load %arg5[%c0_51, %c0_52] : memref<48x3xf32, #tpu.memory_space<vmem>>, vector<48x3xf32>
    %cst_53 = arith.constant dense<0.000000e+00> : vector<128x3xf32>
    %78 = tpu.matmul %76, %77, %cst_53 {dimension_numbers = #tpu.dot_dimension_numbers<[1], [0], [0], [1], [0, 0, 1, 1], [], []>} : vector<128x48xf32>, vector<48x3xf32>, vector<128x3xf32> -> vector<128x3xf32>
    %79 = tpu.transpose %78, [1, 0] : vector<128x3xf32> -> vector<3x128xf32>
    %80 = math.tanh %79 : vector<3x128xf32>
    %cst_54 = arith.constant 1.000000e+01 : f32
    %81 = vector.broadcast %cst_54 : f32 to vector<3x128xf32>
    %82 = arith.mulf %81, %80 : vector<3x128xf32>
    %cst_55 = arith.constant dense<0xFF800000> : vector<128xf32>
    %83 = vector.multi_reduction <maximumf>, %82, %cst_55 [0] : vector<3x128xf32> to vector<128xf32>
    %84 = vector.shape_cast %83 : vector<128xf32> to vector<1x128xf32>
    %85 = vector.broadcast %84 : vector<1x128xf32> to vector<3x128xf32>
    %86 = arith.subf %82, %85 : vector<3x128xf32>
    %87 = math.exp %86 : vector<3x128xf32>
    %cst_56 = arith.constant dense<0.000000e+00> : vector<128xf32>
    %88 = vector.multi_reduction <add>, %87, %cst_56 [0] : vector<3x128xf32> to vector<128xf32>
    %89 = vector.shape_cast %88 : vector<128xf32> to vector<1x128xf32>
    %90 = vector.broadcast %89 : vector<1x128xf32> to vector<3x128xf32>
    %91 = arith.divf %87, %90 : vector<3x128xf32>
    %c0_57 = arith.constant 0 : index
    %c0_58 = arith.constant 0 : index
    %92 = vector.load %arg21[%c0_57, %c0_58] : memref<3x128xf32, #tpu.memory_space<vmem>>, vector<3x128xf32>
    tpu.vector_store %arg21[%c0_57, %c0_58], %91 {strides = array<i32>} : memref<3x128xf32, #tpu.memory_space<vmem>>, vector<3x128xf32>,
    return
  }
  func.func @transform_0(%arg0: i32) -> (i32, i32) {
    %c0_i32 = arith.constant 0 : i32
    %c0_i32_0 = arith.constant 0 : i32
    return %arg0, %c0_i32 : i32, i32
  }
  func.func @transform_1(%arg0: i32) -> (i32, i32) {
    %c0_i32 = arith.constant 0 : i32
    %c0_i32_0 = arith.constant 0 : i32
    %c0_i32_1 = arith.constant 0 : i32
    return %c0_i32, %c0_i32_0 : i32, i32
  }
  func.func @transform_2(%arg0: i32) -> (i32, i32) {
    %c0_i32 = arith.constant 0 : i32
    %c0_i32_0 = arith.constant 0 : i32
    %c0_i32_1 = arith.constant 0 : i32
    return %c0_i32, %c0_i32_0 : i32, i32
  }
  func.func @transform_3(%arg0: i32) -> (i32, i32) {
    %c0_i32 = arith.constant 0 : i32
    %c0_i32_0 = arith.constant 0 : i32
    %c0_i32_1 = arith.constant 0 : i32
    return %c0_i32, %c0_i32_0 : i32, i32
  }
  func.func @transform_4(%arg0: i32) -> (i32, i32) {
    %c0_i32 = arith.constant 0 : i32
    %c0_i32_0 = arith.constant 0 : i32
    %c0_i32_1 = arith.constant 0 : i32
    return %c0_i32, %c0_i32_0 : i32, i32
  }
  func.func @transform_5(%arg0: i32) -> (i32, i32) {
    %c0_i32 = arith.constant 0 : i32
    %c0_i32_0 = arith.constant 0 : i32
    %c0_i32_1 = arith.constant 0 : i32
    return %c0_i32, %c0_i32_0 : i32, i32
  }
  func.func @transform_6(%arg0: i32) -> (i32, i32) {
    %c0_i32 = arith.constant 0 : i32
    %c0_i32_0 = arith.constant 0 : i32
    %c0_i32_1 = arith.constant 0 : i32
    return %c0_i32, %c0_i32_0 : i32, i32
  }
  func.func @transform_7(%arg0: i32) -> (i32, i32) {
    %c0_i32 = arith.constant 0 : i32
    %c0_i32_0 = arith.constant 0 : i32
    %c0_i32_1 = arith.constant 0 : i32
    return %c0_i32, %c0_i32_0 : i32, i32
  }
  func.func @transform_8(%arg0: i32) -> (i32, i32) {
    %c0_i32 = arith.constant 0 : i32
    %c0_i32_0 = arith.constant 0 : i32
    %c0_i32_1 = arith.constant 0 : i32
    return %c0_i32, %c0_i32_0 : i32, i32
  }
  func.func @transform_9(%arg0: i32) -> (i32, i32) {
    %c0_i32 = arith.constant 0 : i32
    %c0_i32_0 = arith.constant 0 : i32
    %c0_i32_1 = arith.constant 0 : i32
    return %c0_i32, %c0_i32_0 : i32, i32
  }
  func.func @transform_10(%arg0: i32) -> (i32, i32) {
    %c0_i32 = arith.constant 0 : i32
    %c0_i32_0 = arith.constant 0 : i32
    %c0_i32_1 = arith.constant 0 : i32
    return %c0_i32, %c0_i32_0 : i32, i32
  }
  func.func @transform_11(%arg0: i32) -> (i32, i32) {
    %c0_i32 = arith.constant 0 : i32
    %c0_i32_0 = arith.constant 0 : i32
    %c0_i32_1 = arith.constant 0 : i32
    return %c0_i32, %c0_i32_0 : i32, i32
  }
  func.func @transform_12(%arg0: i32) -> (i32, i32) {
    %c0_i32 = arith.constant 0 : i32
    %c0_i32_0 = arith.constant 0 : i32
    %c0_i32_1 = arith.constant 0 : i32
    return %c0_i32, %c0_i32_0 : i32, i32
  }
  func.func @transform_13(%arg0: i32) -> (i32, i32) {
    %c0_i32 = arith.constant 0 : i32
    %c0_i32_0 = arith.constant 0 : i32
    %c0_i32_1 = arith.constant 0 : i32
    return %c0_i32, %c0_i32_0 : i32, i32
  }
  func.func @transform_14(%arg0: i32) -> (i32, i32) {
    %c0_i32 = arith.constant 0 : i32
    %c0_i32_0 = arith.constant 0 : i32
    %c0_i32_1 = arith.constant 0 : i32
    return %c0_i32, %c0_i32_0 : i32, i32
  }
  func.func @transform_15(%arg0: i32) -> (i32, i32) {
    %c0_i32 = arith.constant 0 : i32
    %c0_i32_0 = arith.constant 0 : i32
    %c0_i32_1 = arith.constant 0 : i32
    return %c0_i32, %c0_i32_0 : i32, i32
  }
  func.func @transform_16(%arg0: i32) -> (i32, i32) {
    %c0_i32 = arith.constant 0 : i32
    %c0_i32_0 = arith.constant 0 : i32
    %c0_i32_1 = arith.constant 0 : i32
    return %c0_i32, %c0_i32_0 : i32, i32
  }
  func.func @transform_17(%arg0: i32) -> (i32, i32) {
    %c0_i32 = arith.constant 0 : i32
    %c0_i32_0 = arith.constant 0 : i32
    %c0_i32_1 = arith.constant 0 : i32
    return %c0_i32, %c0_i32_0 : i32, i32
  }
  func.func @transform_18(%arg0: i32) -> (i32, i32) {
    %c0_i32 = arith.constant 0 : i32
    %c0_i32_0 = arith.constant 0 : i32
    %c0_i32_1 = arith.constant 0 : i32
    return %c0_i32, %c0_i32_0 : i32, i32
  }
  func.func @transform_19(%arg0: i32) -> (i32, i32) {
    %c0_i32 = arith.constant 0 : i32
    %c0_i32_0 = arith.constant 0 : i32
    %c0_i32_1 = arith.constant 0 : i32
    return %c0_i32, %c0_i32_0 : i32, i32
  }
  func.func @transform_20(%arg0: i32) -> (i32, i32) {
    %c0_i32 = arith.constant 0 : i32
    %c0_i32_0 = arith.constant 0 : i32
    return %c0_i32, %arg0 : i32, i32
  }
}

</mosaic_0001>

<bundles_post_ra>
// kernel: tpu_custom_call.1
= control target key start
LH: loop header
LB: loop body
LE: loop exit
PB: predicated region body
PF: predicated region fallthrough
CT: control target
= control target key end

     0   :  { %s5841_s0 = inlined_call_operand.vmem [shape: f32[288,4], index: 0, kind: input, shape index: {}]   ;;  %s5842_s1 = inlined_call_operand.vmem [shape: f32[16,128], index: 1, kind: input, shape index: {}]   ;;  %s5843_s2 = inlined_call_operand.vmem [shape: f32[128,16], index: 2, kind: input, shape index: {}]   ;;  %s5844_s3 = inlined_call_operand.vmem [shape: f32[48,3], index: 3, kind: input, shape index: {}]   ;;  %s5845_s4 = inlined_call_operand.vmem [shape: f32[48,3], index: 4, kind: input, shape index: {}]   ;;  %s5846_s5 = inlined_call_operand.vmem [shape: f32[3,48], index: 5, kind: input, shape index: {}]   ;;  %s5847_s6 = inlined_call_operand.vmem [shape: f32[4,32], index: 6, kind: input, shape index: {}]   ;;  %s5848_s7 = inlined_call_operand.vmem [shape: f32[1,32], index: 7, kind: input, shape index: {}]   ;;  %s5849_s8 = inlined_call_operand.vmem [shape: f32[32,32], index: 8, kind: input, shape index: {}]   ;;  %s5850_s9 = inlined_call_operand.vmem [shape: f32[1,32], index: 9, kind: input, shape index: {}]   ;;  %s5851_s10 = inlined_call_operand.vmem [shape: f32[64,48], index: 10, kind: input, shape index: {}]   ;;  %s5852_s11 = inlined_call_operand.vmem [shape: f32[1,48], index: 11, kind: input, shape index: {}]   ;;  %s5853_s12 = inlined_call_operand.vmem [shape: f32[32,48], index: 12, kind: input, shape index: {}]   ;;  %s5854_s13 = inlined_call_operand.vmem [shape: f32[1,48], index: 13, kind: input, shape index: {}]   ;;  %s5855_s14 = inlined_call_operand.vmem [shape: f32[32,48], index: 14, kind: input, shape index: {}]   ;;  %s5856_s15 = inlined_call_operand.vmem [shape: f32[1,48], index: 15, kind: input, shape index: {}]   ;;  %s5857_s16 = inlined_call_operand.vmem [shape: f32[32,16], index: 16, kind: input, shape index: {}]   ;;  %s5858_s17 = inlined_call_operand.vmem [shape: f32[1,16], index: 17, kind: input, shape index: {}]   ;;  %s5859_s18 = inlined_call_operand.vmem [shape: f32[48,48], index: 18, kind: input, shape index: {}]   ;;  %s5860_s19 = inlined_call_operand.vmem [shape: f32[1,48], index: 19, kind: input, shape index: {}]   ;;  %s5861_s20 = inlined_call_operand.hbm [shape: f32[3,256], index: 20, kind: output, shape index: {}]  }
   0x1   :  { %5868 = sst [smem:[#allocation12_spill]] %s5841_s0 }
   0x2   :  { %5869 = sst [smem:[#allocation13_spill]] %s5842_s1 }
   0x3   :  { %5870 = sst [smem:[#allocation14_spill]] %s5844_s3 }
   0x4   :  { %5871 = sst [smem:[#allocation15_spill]] %s5845_s4 }
   0x5   :  { %5872 = sst [smem:[#allocation16_spill]] %s5846_s5 }
   0x6   :  { %5873 = sst [smem:[#allocation17_spill]] %s5847_s6 }
   0x7   :  { %5874 = sst [smem:[#allocation18_spill]] %s5848_s7 }
   0x8   :  { %5875 = sst [smem:[#allocation19_spill]] %s5849_s8 }
   0x9   :  { %5876 = sst [smem:[#allocation20_spill]] %s5850_s9 }
   0xa   :  { %25 = vsyncpa [#allocation3], 0 }
   0xb   :  { %27 = vsyncpa [#allocation3 + $0x1], 0  ;;  %s4737_s1 = smov 0   ;;  %s4739_s22 = smov 0  }
   0xc   :  { %s4741_s23 = smov 0   ;;  %s4743_s24 = smov 0  }
   0xd LB: > { %5877 = sst [smem:[#allocation5_spill]] %s4622_s23  ;;  %s4758_s2 = sadd.s32 4294967295, %s4626_s24   ;;  %s4626_s24 = sphi %s4743_s24, %s5904_s24   ;;  %s4622_s23 = sphi %s4741_s23, %s5901_s23   ;;  %s4618_s22 = sphi %s4739_s22, %s5903_s22   ;;  %s4614_s1 = sphi %s4737_s1, %s5902_s1  }
   0xe   : > { %s3688_s25 = sadd.s32 4294967294, %s4626_s24   ;;  %s4762_s3 = sadd.s32 1, %s4626_s24  }
   0xf   : > { %s465_s26 = sadd.s32 1, %s4622_s23  ;;  %s462_s27 = ssub.s32 %s4626_s24, %s4762_s3 }
  0x10   : > { %p475_p0 = scmp.ne.s32.totalorder %s4622_s23, %s4618_s22  ;;  %p463_p1 = scmp.eq.s32.totalorder %s462_s27, 0 }
  0x11   : > { %p476_p2 = scmp.eq.s32.totalorder %s4758_s2, 1  ;;  %p481_p3 = scmp.ne.s32.totalorder %s4618_s22, %s4614_s1 }
  0x12   : > { %p482_p4 = scmp.eq.s32.totalorder %s3688_s25, 1  ;;  %p3691_p7 = scmp.ge.s32.totalorder %s4626_s24, 1 }
  0x13   : > { %s4773_s28 = scalar_select %p463_p1, %s4622_s23, %s465_s26  }
  0x14   : > { %p4775_p5 = por %p476_p2, %p475_p0  ;;  %p4779_p6 = por %p482_p4, %p481_p3 }
  0x15   : > { %5878 = sst [smem:[#allocation6_spill]] %s4773_s28  ;;  %p566_p8 = scmp.lt.s32.totalorder %s4626_s24, 3 }
  0x17   : > { %p567_p9 = pnand %p3691_p7, %p566_p8 }
  0x19   : > { %570 = sbr.rel (%p567_p9) target bundleno = 2484 (0x9b4), region = 100 }
  0x1e   : > { %s5881_s6 = sld [smem:[#allocation17_spill]]  ;;  %vm711_vm0 = vcmask 1043456   ;;  %s624_s21 = smul.u32 18, %s4758_s2  ;;  %vm656_vm1 = vcmask 31744   ;;  %vm899_vm2 = vcmask 261120   ;;  %vm1929_vm3 = vcmask 392192  }
  0x1f   : > { %s5882_s28 = sld [smem:[#allocation12_spill]]  ;;  %vm2123_vm4 = vcmask 23552   ;;  %vm2531_vm5 = vcmask 1042432   ;;  %s4629_s30 = smov 32   ;;  %vm3313_vm6 = vcmask 130048  }
  0x20   : > { %p625_p10 = scmp.lt.s32.totalorder %s624_s21, 35  ;;  %s5883_s8 = sld [smem:[#allocation19_spill]] }
  0x21   : > { %s5884_s7 = sld [smem:[#allocation18_spill]]  ;;  %s4630_s0 = smov 16  }
  0x22   : > { %s5906_s21 = smov (!%p625_p10, %s624_s21), 35  ;;  %s5886_s9 = sld [smem:[#allocation20_spill]] }
  0x23   : > { %s3693_s25 = sshll.u32 %s5906_s21, 3  ;;  %s5888_s5 = sld [smem:[#allocation16_spill]] }
  0x24   : > { %v648_v0 = vld [vmem:[%s5881_s6] sm:$0xf]  ;;  %s5885_s6 = sld [smem:[#allocation13_spill]]  ;;  %s621_s27 = sand.u32 1, %s4618_s22  }
  0x25   : > { %4081 = vmatprep.subr.msk.mxu0 %vm711_vm0, %v648_v0  ;;  %s4792_s23 = scalar_lea.vmem %s5882_s28, %s3693_s25  ;;  %s5899_s25 = sld [smem:[#allocation15_spill]] }
  0x26   : > { %4082 = vmatpush3.msk.msra.mxu0 %vm711_vm0, %v648_v0  ;;  %v630_v1 = vld [vmem:[%s4792_s23] sm:$0xff]  ;;  %v631_v2 = vld [vmem:[%s4792_s23 + $0x8] sm:$0xff]  ;;  %v632_v3 = vld [vmem:[%s4792_s23 + $0x10] sm:$0xff]  ;;  %s3692_s28 = sshll.u32 %s621_s27, 2 }
  0x27   : > { %4083 = vmatprep.mubr.msk.f32.mxu0 %vm656_vm1, %v630_v1  ;;  %v633_v4 = vld [vmem:[%s4792_s23 + $0x18] sm:$0xff]  ;;  %v634_v5 = vld [vmem:[%s4792_s23 + $0x20] sm:$0xff]  ;;  %v635_v6 = vld [vmem:[%s4792_s23 + $0x28] sm:$0xff]  ;;  %s623_s21 = scalar_lea.vmem [#allocation2], %s3692_s28 }
  0x28   : > { %4084 = vmatmul.mubr.msk.f32.vlgmr.msra.gmra.mxu0 %vm656_vm1, %v631_v2  ;;  %v636_v7 = vld [vmem:[%s4792_s23 + $0x30] sm:$0xff]  ;;  %v637_v8 = vld [vmem:[%s4792_s23 + $0x38] sm:$0xff]  ;;  %v638_v9 = vld [vmem:[%s4792_s23 + $0x40] sm:$0xff]  ;;  %s3629_s26 = sshll.u32 %s623_s21, 4  ;;  %s3630_s26 = int_to_ptr.vmem [resolvable:$true] %s3629_s26 }
  0x29   : > { %4086 = vmatprep.mubr.msk.f32.mxu0 %vm656_vm1, %v632_v3  ;;  %v639_v10 = vld [vmem:[%s4792_s23 + $0x48] sm:$0xff]  ;;  %v640_v11 = vld [vmem:[%s4792_s23 + $0x50] sm:$0xff]  ;;  %v641_v12 = vld [vmem:[%s4792_s23 + $0x58] sm:$0xff] }
  0x2a   : > { %v642_v13 = vld [vmem:[%s4792_s23 + $0x60] sm:$0xff]  ;;  %v643_v14 = vld [vmem:[%s4792_s23 + $0x68] sm:$0xff]  ;;  %v644_v15 = vld [vmem:[%s4792_s23 + $0x70] sm:$0xff] }
  0x2b   : > { %v645_v16 = vld [vmem:[%s4792_s23 + $0x78] sm:$0xff]  ;;  %v646_v17 = vld [vmem:[%s4792_s23 + $0x80] sm:$0xff]  ;;  %v647_v18 = vld [vmem:[%s4792_s23 + $0x88] sm:$0xff] }
  0x2c   : > { %4087 = vmatmul.mubr.msk.f32.gmra.mxu0 %vm656_vm1, %v633_v4  ;;  %v891_v19 = vld [vmem:[%s5883_s8 + $0x18] sm:$0xff]  ;;  %v890_v20 = vld [vmem:[%s5883_s8 + $0x10] sm:$0xff]  ;;  %v889_v21 = vld [vmem:[%s5883_s8 + $0x8] sm:$0xff] }
  0x2d   : > { %4089 = vmatprep.mubr.msk.f32.mxu0 %vm656_vm1, %v634_v5  ;;  %4110 = vmatprep.subr.mxu1 %v891_v19  ;;  %v888_v22 = vld [vmem:[%s5883_s8] sm:$0xff] }
  0x2e   : > { %4111 = vmatpush3.msra.mxu1 %v891_v19  ;;  %v4845_v23 = vld [vmem:[%s5884_s7] ss:$0 sm:$0xff]  ;;  %s5887_s7 = sld [smem:[#allocation14_spill]] }
  0x2f   : > { %4112 = vmatprep.subr.mxu1 %v890_v20  ;;  %v4901_v19 = vld [vmem:[%s5885_s6] sm:$0xff] }
  0x30   : > { %4090 = vmatmul.mubr.msk.f32.gmra.mxu0 %vm656_vm1, %v635_v6  ;;  %4113 = vmatpush3.msra.mxu1 %v890_v20 }
  0x31   : > { %4092 = vmatprep.mubr.msk.f32.mxu0 %vm656_vm1, %v636_v7  ;;  %4114 = vmatprep.subr.mxu1 %v889_v21 }
  0x32   : > { %4115 = vmatpush3.msra.mxu1 %v889_v21 }
  0x33   : > { %4116 = vmatprep.subr.mxu1 %v888_v22 }
  0x34   : > { %4093 = vmatmul.mubr.msk.f32.gmra.mxu0 %vm656_vm1, %v637_v8  ;;  %4117 = vmatpush3.msra.mxu1 %v888_v22 }
  0x35   : > { %4095 = vmatprep.mubr.msk.f32.mxu0 %vm656_vm1, %v638_v9 }
  0x38   : > { %4096 = vmatmul.mubr.msk.f32.gmra.mxu0 %vm656_vm1, %v639_v10 }
  0x39   : > { %4098 = vmatprep.mubr.msk.f32.mxu0 %vm656_vm1, %v640_v11 }
  0x3c   : > { %4099 = vmatmul.mubr.msk.f32.gmra.mxu0 %vm656_vm1, %v641_v12 }
  0x3d   : > { %4101 = vmatprep.mubr.msk.f32.mxu0 %vm656_vm1, %v642_v13 }
  0x40   : > { %4102 = vmatmul.mubr.msk.f32.gmra.mxu0 %vm656_vm1, %v643_v14  ;;  %v1195_v14 = vld [vmem:[%s5851_s10 + $0x38] sm:$0xff] }
  0x41   : > { %4104 = vmatprep.mubr.msk.f32.mxu0 %vm656_vm1, %v644_v15  ;;  %4180 = vmatprep.subr.mxu1 %v1195_v14  ;;  %v1194_v15 = vld [vmem:[%s5851_s10 + $0x30] sm:$0xff] }
  0x44   : > { %4105 = vmatmul.mubr.msk.f32.gmra.mxu0 %vm656_vm1, %v645_v16  ;;  %v1193_v16 = vld [vmem:[%s5851_s10 + $0x28] sm:$0xff] }
  0x45   : > { %4107 = vmatprep.mubr.msk.f32.mxu0 %vm656_vm1, %v646_v17  ;;  %v1192_v17 = vld [vmem:[%s5851_s10 + $0x20] sm:$0xff] }
  0x48   : > { %4108 = vmatmul.mubr.msk.f32.gmra.mxu0 %vm656_vm1, %v647_v18  ;;  %v1370_v18 = vld [vmem:[%s5853_s12 + $0x18] sm:$0xff] }
  0x49   : > { %4177 = vmatprep.mubr.f32.mxu0 %v4901_v19 }
  0xe8   : > { %v4085_v24 = vpop.f32.mrf.mxu0 }
  0xe9   : > { %v787_v25 = vadd.f32 %v4085_v24, %v4845_v23 }
  0xea   : > { %v781_v26 = vpop.f32.mrf.mxu0 }
  0xeb   : > { %v782_v27 = vadd.f32 %v4845_v23, %v781_v26  ;;  %v871_v30 = vmax.f32 %v787_v25, 0.0 }
  0xec   : > { %v4088_v28 = vpop.f32.mrf.mxu0 }
  0xed   : > { %v870_v29 = vmax.f32 %v782_v27, 0.0  ;;  %v797_v31 = vadd.f32 %v4088_v28, %v4845_v23 }
  0xee   : > { %v791_v32 = vpop.f32.mrf.mxu0 }
  0xef   : > { %v792_v33 = vadd.f32 %v4845_v23, %v791_v32  ;;  %4118 = vmatprep.mubr.msk.f32.mxu1 %vm899_vm2, %v870_v29  ;;  %v873_v36 = vmax.f32 %v797_v31, 0.0 }
  0xf0   : > { %v4091_v34 = vpop.f32.mrf.mxu0  ;;  %4119 = vmatmul.mubr.msk.f32.vlgmr.msra.gmra.mxu1 %vm899_vm2, %v871_v30 }
  0xf1   : > { %v872_v35 = vmax.f32 %v792_v33, 0.0  ;;  %v807_v37 = vadd.f32 %v4091_v34, %v4845_v23  ;;  %4181 = vmatpush3.msra.mxu1 %v1195_v14  ;;  %v3714_v34 = vld [vmem:[%s5886_s9] ss:$0 sm:$0xff]  ;;  %v1925_v14 = vld [vmem:[%s5887_s7 + $0x10] sm:$0xff] }
  0xf2   : > { %v801_v38 = vpop.f32.mrf.mxu0  ;;  %4182 = vmatprep.subr.mxu1 %v1194_v15 }
  0xf3   : > { %v802_v39 = vadd.f32 %v4845_v23, %v801_v38  ;;  %4121 = vmatprep.mubr.msk.f32.mxu1 %vm899_vm2, %v872_v35  ;;  %v875_v42 = vmax.f32 %v807_v37, 0.0  ;;  %4183 = vmatpush3.msra.mxu1 %v1194_v15  ;;  %v1924_v15 = vld [vmem:[%s5887_s7 + $0x8] sm:$0xff] }
  0xf4   : > { %v4094_v40 = vpop.f32.mrf.mxu0  ;;  %4122 = vmatmul.mubr.msk.f32.gmra.mxu1 %vm899_vm2, %v873_v36  ;;  %4184 = vmatprep.subr.mxu1 %v1193_v16 }
  0xf5   : > { %v874_v41 = vmax.f32 %v802_v39, 0.0  ;;  %v817_v43 = vadd.f32 %v4094_v40, %v4845_v23  ;;  %4185 = vmatpush3.msra.mxu1 %v1193_v16  ;;  %v1923_v16 = vld [vmem:[%s5887_s7] sm:$0xff] }
  0xf6   : > { %v811_v44 = vpop.f32.mrf.mxu0  ;;  %4186 = vmatprep.subr.mxu1 %v1192_v17 }
  0xf7   : > { %v812_v45 = vadd.f32 %v4845_v23, %v811_v44  ;;  %4124 = vmatprep.mubr.msk.f32.mxu1 %vm899_vm2, %v874_v41  ;;  %v877_v48 = vmax.f32 %v817_v43, 0.0  ;;  %4187 = vmatpush3.msra.mxu1 %v1192_v17 }
  0xf8   : > { %v4097_v46 = vpop.f32.mrf.mxu0  ;;  %4125 = vmatmul.mubr.msk.f32.gmra.mxu1 %vm899_vm2, %v875_v42  ;;  %4202 = vmatprep.subr.mxu1 %v1370_v18 }
  0xf9   : > { %v876_v47 = vmax.f32 %v812_v45, 0.0  ;;  %v827_v49 = vadd.f32 %v4097_v46, %v4845_v23  ;;  %v1369_v46 = vld [vmem:[%s5853_s12 + $0x10] sm:$0xff] }
  0xfa   : > { %v821_v50 = vpop.f32.mrf.mxu0 }
  0xfb   : > { %v822_v51 = vadd.f32 %v4845_v23, %v821_v50  ;;  %4127 = vmatprep.mubr.msk.f32.mxu1 %vm899_vm2, %v876_v47  ;;  %v879_v54 = vmax.f32 %v827_v49, 0.0  ;;  %v1367_v50 = vld [vmem:[%s5853_s12] sm:$0xff] }
  0xfc   : > { %v4100_v52 = vpop.f32.mrf.mxu0  ;;  %4128 = vmatmul.mubr.msk.f32.gmra.mxu1 %vm899_vm2, %v877_v48  ;;  %v1368_v48 = vld [vmem:[%s5853_s12 + $0x8] sm:$0xff] }
  0xfd   : > { %v878_v53 = vmax.f32 %v822_v51, 0.0  ;;  %v837_v55 = vadd.f32 %v4100_v52, %v4845_v23 }
  0xfe   : > { %v831_v56 = vpop.f32.mrf.mxu0 }
  0xff   : > { %v832_v57 = vadd.f32 %v4845_v23, %v831_v56  ;;  %4130 = vmatprep.mubr.msk.f32.mxu1 %vm899_vm2, %v878_v53  ;;  %v881_v60 = vmax.f32 %v837_v55, 0.0 }
 0x100   : > { %v4103_v58 = vpop.f32.mrf.mxu0  ;;  %4131 = vmatmul.mubr.msk.f32.gmra.mxu1 %vm899_vm2, %v879_v54 }
 0x101   : > { %v880_v59 = vmax.f32 %v832_v57, 0.0  ;;  %v847_v61 = vadd.f32 %v4103_v58, %v4845_v23 }
 0x102   : > { %v841_v62 = vpop.f32.mrf.mxu0 }
 0x103   : > { %v842_v63 = vadd.f32 %v4845_v23, %v841_v62  ;;  %4133 = vmatprep.mubr.msk.f32.mxu1 %vm899_vm2, %v880_v59  ;;  %v883_v2 = vmax.f32 %v847_v61, 0.0  ;;  %v1191_v61 = vld [vmem:[%s5851_s10 + $0x18] sm:$0xff]  ;;  %v1190_v62 = vld [vmem:[%s5851_s10 + $0x10] sm:$0xff] }
 0x104   : > { %v4106_v0 = vpop.f32.mrf.mxu0  ;;  %4134 = vmatmul.mubr.msk.f32.gmra.mxu1 %vm899_vm2, %v881_v60  ;;  %v5010_v60 = vld [vmem:[%s5885_s6 + $0x8] sm:$0xff] }
 0x105   : > { %v882_v1 = vmax.f32 %v842_v63, 0.0  ;;  %v857_v3 = vadd.f32 %v4106_v0, %v4845_v23  ;;  %v1189_v63 = vld [vmem:[%s5851_s10 + $0x8] sm:$0xff]  ;;  %v1188_v0 = vld [vmem:[%s5851_s10] sm:$0xff] }
 0x106   : > { %v851_v4 = vpop.f32.mrf.mxu0 }
 0x107   : > { %v852_v5 = vadd.f32 %v4845_v23, %v851_v4  ;;  %4136 = vmatprep.mubr.msk.f32.mxu1 %vm899_vm2, %v882_v1  ;;  %v885_v9 = vmax.f32 %v857_v3, 0.0  ;;  %v1574_v1 = vld [vmem:[%s5855_s14 + $0x18] sm:$0xff]  ;;  %v1927_v3 = vld [vmem:[%s5887_s7 + $0x20] sm:$0xff] }
 0x108   : > { %v4109_v6 = vpop.f32.mrf.mxu0  ;;  %4137 = vmatmul.mubr.msk.f32.gmra.mxu1 %vm899_vm2, %v883_v2  ;;  %v1928_v2 = vld [vmem:[%s5887_s7 + $0x28] sm:$0xff] }
 0x109   : > { %v884_v7 = vmax.f32 %v852_v5, 0.0  ;;  %v867_v8 = vadd.f32 %v4109_v6, %v4845_v23 }
 0x10a   : > { %v861_v10 = vpop.f32.mrf.mxu0 }
 0x10b   : > { %v862_v11 = vadd.f32 %v4845_v23, %v861_v10  ;;  %4139 = vmatprep.mubr.msk.f32.mxu1 %vm899_vm2, %v884_v7  ;;  %v887_v12 = vmax.f32 %v867_v8, 0.0  ;;  %v1573_v10 = vld [vmem:[%s5855_s14 + $0x10] sm:$0xff] }
 0x10c   : > { %4140 = vmatmul.mubr.msk.f32.gmra.mxu1 %vm899_vm2, %v885_v9 }
 0x10d   : > { %v886_v13 = vmax.f32 %v862_v11, 0.0  ;;  %v1572_v11 = vld [vmem:[%s5855_s14 + $0x8] sm:$0xff] }
 0x10f   : > { %4142 = vmatprep.mubr.msk.f32.mxu1 %vm899_vm2, %v886_v13  ;;  %v1926_v13 = vld [vmem:[%s5887_s7 + $0x18] sm:$0xff]  ;;  %s4631_s7 = smov [#allocation2]  }
 0x110   : > { %4143 = vmatmul.mubr.msk.f32.gmra.mxu1 %vm899_vm2, %v887_v12  ;;  %v1571_v12 = vld [vmem:[%s5855_s14] sm:$0xff]  ;;  %s4570_s9 = sshll.u32 %s4631_s7, 4  ;;  %s4571_s9 = int_to_ptr.vmem [resolvable:$false] %s4570_s9 }
 0x111   : > { %p4573_p0 = scmp.lt.s32.totalorder %s3630_s26, %s4571_s9 }
 0x1b0   : > { %v4120_v20 = vpop.f32.mrf.mxu1 }
 0x1b1   : > { %v4956_v52 = vadd.f32 %v4120_v20, %v3714_v34 }
 0x1b2   : > { %v1020_v21 = vpop.f32.mrf.mxu1 }
 0x1b3   : > { %v4935_v47 = vadd.f32 %v3714_v34, %v1020_v21 }
 0x1b4   : > { %v4123_v22 = vpop.f32.mrf.mxu1 }
 0x1b5   : > { %v4972_v56 = vadd.f32 %v4123_v22, %v3714_v34 }
 0x1b6   : > { %v1030_v23 = vpop.f32.mrf.mxu1 }
 0x1b7   : > { %v4961_v54 = vadd.f32 %v3714_v34, %v1030_v23 }
 0x1b8   : > { %v4904_v24 = vpop.f32.mrf.mxu1 }
 0x1b9   : > { %v4981_v59 = vadd.f32 %v4904_v24, %v3714_v34 }
 0x1ba   : > { %v1040_v25 = vpop.f32.mrf.mxu1 }
 0x1bb   : > { %v4977_v58 = vadd.f32 %v3714_v34, %v1040_v25 }
 0x1bc   : > { %v4129_v26 = vpop.f32.mrf.mxu1 }
 0x1bd   : > { %v4964_v55 = vadd.f32 %v4129_v26, %v3714_v34  ;;  %v4628_v26 = vmov 1966171168  }
 0x1be   : > { %v1050_v27 = vpop.f32.mrf.mxu1 }
 0x1bf   : > { %v4974_v57 = vadd.f32 %v3714_v34, %v1050_v27  ;;  %v1731_v27 = vunpack.c.l.s4 %v4628_v26 }
 0x1c0   : > { %v4132_v28 = vpop.f32.mrf.mxu1 }
 0x1c1   : > { %v4952_v51 = vadd.f32 %v4132_v28, %v3714_v34  ;;  %v1733_v28 = vlaneseq }
 0x1c2   : > { %v1060_v29 = vpop.f32.mrf.mxu1 }
 0x1c3   : > { %v4958_v53 = vadd.f32 %v3714_v34, %v1060_v29 }
 0x1c4   : > { %v4135_v30 = vpop.f32.mrf.mxu1 }
 0x1c5   : > { %v4927_v45 = vadd.f32 %v4135_v30, %v3714_v34 }
 0x1c6   : > { %v1070_v31 = vpop.f32.mrf.mxu1 }
 0x1c7   : > { %v4944_v49 = vadd.f32 %v3714_v34, %v1070_v31  ;;  %v1732_v31 = vunpack.c.0.s8 %v1731_v27 }
 0x1c8   : > { %v4138_v32 = vpop.f32.mrf.mxu1 }
 0x1c9   : > { %v4915_v40 = vadd.f32 %v4138_v32, %v3714_v34  ;;  %v1734_v32 = vshrl.u32 %v1733_v28, 7 }
 0x1ca   : > { %v1080_v33 = vpop.f32.mrf.mxu1 }
 0x1cb   : > { %v4921_v43 = vadd.f32 %v3714_v34, %v1080_v33 }
 0x1cc   : > { %v4141_v35 = vpop.f32.mrf.mxu1 }
 0x1cd   : > { %v4909_v36 = vadd.f32 %v4141_v35, %v3714_v34 }
 0x1ce   : > { %v1090_v37 = vpop.f32.mrf.mxu1 }
 0x1cf   : > { %v4911_v38 = vadd.f32 %v3714_v34, %v1090_v37  ;;  %4145 = vmatprep.subr.mxu0 %v4909_v36  ;;  %v3737_v37 = vld [vmem:[%s5852_s11] ss:$0 sm:$0xff] }
 0x1d0   : > { %v4144_v39 = vpop.f32.mrf.mxu1  ;;  %4146 = vmatpush3.msra.mxu0 %v4909_v36 }
 0x1d1   : > { %4147 = vmatprep.subr.mxu0 %v4911_v38  ;;  %v4918_v41 = vadd.f32 %v4144_v39, %v3714_v34 }
 0x1d2   : > { %v1100_v42 = vpop.f32.mrf.mxu1  ;;  %4148 = vmatpush3.msra.mxu0 %v4911_v38 }
 0x1d3   : > { %v4923_v44 = vadd.f32 %v3714_v34, %v1100_v42  ;;  %4149 = vmatprep.subr.mxu0 %v4915_v40 }
 0x1d4   : > { %4150 = vmatpush3.msra.mxu0 %v4915_v40 }
 0x1d5   : > { %4151 = vmatprep.subr.mxu0 %v4921_v43  ;;  %4188 = vmatprep.mubr.msk.f32.mxu1 %vm899_vm2, %v4923_v44 }
 0x1d6   : > { %4152 = vmatpush3.msra.mxu0 %v4921_v43  ;;  %4189 = vmatmul.mubr.msk.f32.vlgmr.msra.gmra.mxu1 %vm899_vm2, %v4918_v41 }
 0x1d7   : > { %4203 = vmatpush3.msra.mxu1 %v1370_v18  ;;  %4153 = vmatprep.subr.mxu0 %v4927_v45 }
 0x1d8   : > { %4204 = vmatprep.subr.mxu1 %v1369_v46  ;;  %4210 = vmatprep.mubr.msk.f32.mxu1 %vm899_vm2, %v4935_v47 }
 0x1d9   : > { %4154 = vmatpush3.msra.mxu0 %v4927_v45  ;;  %4205 = vmatpush3.msra.mxu1 %v1369_v46 }
 0x1da   : > { %4155 = vmatprep.subr.mxu0 %v4944_v49  ;;  %4206 = vmatprep.subr.mxu1 %v1368_v48 }
 0x1db   : > { %4156 = vmatpush3.msra.mxu0 %v4944_v49  ;;  %4207 = vmatpush3.msra.mxu1 %v1368_v48 }
 0x1dc   : > { %4157 = vmatprep.subr.mxu0 %v4952_v51  ;;  %4208 = vmatprep.subr.mxu1 %v1367_v50 }
 0x1dd   : > { %4158 = vmatpush3.msra.mxu0 %v4952_v51  ;;  %4209 = vmatpush3.msra.mxu1 %v1367_v50 }
 0x1de   : > { %4159 = vmatprep.subr.mxu0 %v4958_v53  ;;  %4211 = vmatmul.mubr.msk.f32.vlgmr.msra.gmra.mxu1 %vm899_vm2, %v4956_v52 }
 0x1df   : > { %4160 = vmatpush3.msra.mxu0 %v4958_v53  ;;  %4213 = vmatprep.mubr.msk.f32.mxu1 %vm899_vm2, %v4961_v54 }
 0x1e0   : > { %4161 = vmatprep.subr.mxu0 %v4964_v55  ;;  %4266 = vmatprep.subr.mxu1 %v1928_v2 }
 0x1e1   : > { %4162 = vmatpush3.msra.mxu0 %v4964_v55  ;;  %4267 = vmatpush3.msra.mxu1 %v1928_v2 }
 0x1e2   : > { %4163 = vmatprep.subr.mxu0 %v4974_v57  ;;  %4214 = vmatmul.mubr.msk.f32.gmra.mxu1 %vm899_vm2, %v4972_v56 }
 0x1e3   : > { %4164 = vmatpush3.msra.mxu0 %v4974_v57  ;;  %4216 = vmatprep.mubr.msk.f32.mxu1 %vm899_vm2, %v4977_v58 }
 0x1e4   : > { %4165 = vmatprep.subr.mxu0 %v4981_v59  ;;  %4268 = vmatprep.subr.mxu1 %v1927_v3 }
 0x1e5   : > { %4166 = vmatpush3.msra.mxu0 %v4981_v59  ;;  %4269 = vmatpush3.msra.mxu1 %v1927_v3 }
 0x1e6   : > { %4167 = vmatprep.subr.mxu0 %v4977_v58  ;;  %4217 = vmatmul.mubr.msk.f32.gmra.mxu1 %vm899_vm2, %v4981_v59 }
 0x1e7   : > { %4168 = vmatpush3.msra.mxu0 %v4977_v58  ;;  %4219 = vmatprep.mubr.msk.f32.mxu1 %vm899_vm2, %v4974_v57 }
 0x1e8   : > { %4169 = vmatprep.subr.mxu0 %v4972_v56  ;;  %4270 = vmatprep.subr.mxu1 %v1926_v13 }
 0x1e9   : > { %4170 = vmatpush3.msra.mxu0 %v4972_v56  ;;  %4271 = vmatpush3.msra.mxu1 %v1926_v13 }
 0x1ea   : > { %4171 = vmatprep.subr.mxu0 %v4961_v54  ;;  %4220 = vmatmul.mubr.msk.f32.gmra.mxu1 %vm899_vm2, %v4964_v55 }
 0x1eb   : > { %4172 = vmatpush3.msra.mxu0 %v4961_v54  ;;  %4222 = vmatprep.mubr.msk.f32.mxu1 %vm899_vm2, %v4958_v53 }
 0x1ec   : > { %4173 = vmatprep.subr.mxu0 %v4956_v52  ;;  %4272 = vmatprep.subr.mxu1 %v1925_v14 }
 0x1ed   : > { %4174 = vmatpush3.msra.mxu0 %v4956_v52  ;;  %4273 = vmatpush3.msra.mxu1 %v1925_v14 }
 0x1ee   : > { %4175 = vmatprep.subr.mxu0 %v4935_v47  ;;  %4223 = vmatmul.mubr.msk.f32.gmra.mxu1 %vm899_vm2, %v4952_v51 }
 0x1ef   : > { %4176 = vmatpush3.msra.mxu0 %v4935_v47  ;;  %4225 = vmatprep.mubr.msk.f32.mxu1 %vm899_vm2, %v4944_v49 }
 0x1f0   : > { %4178 = vmatmul.mubr.f32.vlgmr.msra.gmra.mxu0 %v5010_v60  ;;  %4191 = vmatprep.subr.mxu0 %v1191_v61 }
 0x1f1   : > { %4192 = vmatpush3.msra.mxu0 %v1191_v61  ;;  %4274 = vmatprep.subr.mxu1 %v1924_v15 }
 0x1f2   : > { %4226 = vmatmul.mubr.msk.f32.gmra.mxu1 %vm899_vm2, %v4927_v45  ;;  %4193 = vmatprep.subr.mxu0 %v1190_v62 }
 0x1f3   : > { %4228 = vmatprep.mubr.msk.f32.mxu1 %vm899_vm2, %v4921_v43  ;;  %4194 = vmatpush3.msra.mxu0 %v1190_v62 }
 0x1f4   : > { %4195 = vmatprep.subr.mxu0 %v1189_v63  ;;  %4275 = vmatpush3.msra.mxu1 %v1924_v15 }
 0x1f5   : > { %4196 = vmatpush3.msra.mxu0 %v1189_v63  ;;  %4276 = vmatprep.subr.mxu1 %v1923_v16  ;;  %v5123_v63 = vld [vmem:[%s5854_s13] ss:$0 sm:$0xff] }
 0x1f6   : > { %4229 = vmatmul.mubr.msk.f32.gmra.mxu1 %vm899_vm2, %v4915_v40  ;;  %4197 = vmatprep.subr.mxu0 %v1188_v0 }
 0x1f7   : > { %4231 = vmatprep.mubr.msk.f32.mxu1 %vm899_vm2, %v4911_v38  ;;  %4198 = vmatpush3.msra.mxu0 %v1188_v0  ;;  %v5125_v0 = vsub.s32 0, %v1734_v32 }
 0x1f8   : > { %4234 = vmatprep.subr.mxu0 %v1574_v1  ;;  %4277 = vmatpush3.msra.mxu1 %v1923_v16 }
 0x1fa   : > { %4232 = vmatmul.mubr.msk.f32.gmra.mxu1 %vm899_vm2, %v4909_v36 }
 0x296   : > { %v4190_v17 = vpop.f32.mrf.mxu1 }
 0x298   : > { %v1268_v18 = vpop.f32.mrf.mxu1 }
 0x29e   : > { %v4212_v20 = vpop.f32.mrf.mxu1 }
 0x2a0   : > { %v1492_v21 = vpop.f32.mrf.mxu1 }
 0x2a2   : > { %v4215_v22 = vpop.f32.mrf.mxu1 }
 0x2a3   : > { %v1508_v28 = vadd.f32 %v4215_v22, %v5123_v63 }
 0x2a4   : > { %v1502_v23 = vpop.f32.mrf.mxu1 }
 0x2a6   : > { %v4218_v24 = vpop.f32.mrf.mxu1 }
 0x2a7   : > { %v1518_v22 = vadd.f32 %v4218_v24, %v5123_v63 }
 0x2a8   : > { %v1512_v25 = vpop.f32.mrf.mxu1 }
 0x2aa   : > { %v5108_v29 = vpop.f32.mrf.mxu1 }
 0x2ab   : > { %v1528_v24 = vadd.f32 %v5108_v29, %v5123_v63 }
 0x2ac   : > { %v1522_v35 = vpop.f32.mrf.mxu1 }
 0x2b0   : > { %v4179_v4 = vpop.f32.mrf.mxu0 }
 0x2b1   : > { %v1183_v5 = vadd.f32 %v4179_v4, %v4918_v41  ;;  %v5113_v41 = vsub.s32 %v1732_v31, %v1734_v32 }
 0x2b2   : > { %v1177_v6 = vpop.f32.mrf.mxu0 }
 0x2b3   : > { %v1178_v7 = vadd.f32 %v1177_v6, %v4923_v44  ;;  %v1187_v9 = vmul.f32 0.11111111, %v1183_v5  ;;  %v5115_v44 = vpop.f32.mrf.mxu1  ;;  %v1493_v6 = vadd.f32 %v5123_v63, %v1492_v21 }
 0x2b4   : > { %v1538_v29 = vadd.f32 %v5115_v44, %v5123_v63 }
 0x2b5   : > { %v1186_v8 = vmul.f32 0.11111111, %v1178_v7 }
 0x2b7   : > { %4199 = vmatprep.mubr.msk.f32.mxu0 %vm899_vm2, %v1186_v8 }
 0x2b8   : > { %4200 = vmatmul.mubr.msk.f32.vlgmr.msra.gmra.mxu0 %vm899_vm2, %v1187_v9  ;;  %v1498_v9 = vadd.f32 %v4212_v20, %v5123_v63 }
 0x2b9   : > { %4235 = vmatpush3.msra.mxu0 %v1574_v1  ;;  %4242 = vmatprep.mubr.msk.f32.mxu0 %vm899_vm2, %v4935_v47  ;;  %v1532_v1 = vpop.f32.mrf.mxu1 }
 0x2ba   : > { %4236 = vmatprep.subr.mxu0 %v1573_v10 }
 0x2bb   : > { %4237 = vmatpush3.msra.mxu0 %v1573_v10  ;;  %v4227_v15 = vpop.f32.mrf.mxu1 }
 0x2bc   : > { %4238 = vmatprep.subr.mxu0 %v1572_v11 }
 0x2bd   : > { %4239 = vmatpush3.msra.mxu0 %v1572_v11  ;;  %v1542_v31 = vpop.f32.mrf.mxu1 }
 0x2be   : > { %4240 = vmatprep.subr.mxu0 %v1571_v12 }
 0x2bf   : > { %4241 = vmatpush3.msra.mxu0 %v1571_v12  ;;  %v1503_v12 = vadd.f32 %v5123_v63, %v1502_v23  ;;  %v1513_v23 = vadd.f32 %v5123_v63, %v1512_v25  ;;  %v1523_v25 = vadd.f32 %v5123_v63, %v1522_v35  ;;  %v1533_v35 = vadd.f32 %v5123_v63, %v1532_v1 }
 0x2c0   : > { %4243 = vmatmul.mubr.msk.f32.vlgmr.msra.gmra.mxu0 %vm899_vm2, %v4956_v52  ;;  %v1543_v1 = vadd.f32 %v5123_v63, %v1542_v31 }
 0x2c1   : > { %4245 = vmatprep.mubr.msk.f32.mxu0 %vm899_vm2, %v4961_v54 }
 0x2c4   : > { %4246 = vmatmul.mubr.msk.f32.gmra.mxu0 %vm899_vm2, %v4972_v56 }
 0x2c5   : > { %4248 = vmatprep.mubr.msk.f32.mxu0 %vm899_vm2, %v4977_v58 }
 0x2c8   : > { %4249 = vmatmul.mubr.msk.f32.gmra.mxu0 %vm899_vm2, %v4981_v59 }
 0x2c9   : > { %4251 = vmatprep.mubr.msk.f32.mxu0 %vm899_vm2, %v4974_v57 }
 0x2cc   : > { %4252 = vmatmul.mubr.msk.f32.gmra.mxu0 %vm899_vm2, %v4964_v55 }
 0x2cd   : > { %4254 = vmatprep.mubr.msk.f32.mxu0 %vm899_vm2, %v4958_v53 }
 0x2d0   : > { %4255 = vmatmul.mubr.msk.f32.gmra.mxu0 %vm899_vm2, %v4952_v51 }
 0x2d1   : > { %4257 = vmatprep.mubr.msk.f32.mxu0 %vm899_vm2, %v4944_v49 }
 0x2d4   : > { %4258 = vmatmul.mubr.msk.f32.gmra.mxu0 %vm899_vm2, %v4927_v45 }
 0x2d5   : > { %4260 = vmatprep.mubr.msk.f32.mxu0 %vm899_vm2, %v4921_v43 }
 0x2d8   : > { %4261 = vmatmul.mubr.msk.f32.gmra.mxu0 %vm899_vm2, %v4915_v40 }
 0x2d9   : > { %4263 = vmatprep.mubr.msk.f32.mxu0 %vm899_vm2, %v4911_v38 }
 0x2dc   : > { %4264 = vmatmul.mubr.msk.f32.gmra.mxu0 %vm899_vm2, %v4909_v36 }
 0x2dd   : > { %4334 = vmatprep.mubr.f32.mxu0 %v4901_v19 }
 0x378   : > { %v4201_v30 = vpop.f32.mrf.mxu0 }
 0x379   : > { %v1355_v46 = vadd.f32 %v4201_v30, %v4190_v17 }
 0x37a   : > { %v1349_v33 = vpop.f32.mrf.mxu0 }
 0x37b   : > { %v1350_v34 = vadd.f32 %v1349_v33, %v1268_v18  ;;  %v1366_v2 = vadd.f32 %v3737_v37, %v1355_v46 }
 0x37d   : > { %v1365_v39 = vadd.f32 %v3737_v37, %v1350_v34  ;;  %v1785_v16 = vrot.slane %v1366_v2, %v5113_v41  ;;  %v1778_v30 = vcombine.high %v1366_v2, %v1366_v2 }
 0x37f   : > { %v1729_v42 = vcombine.high %v1365_v39, %v1365_v39  ;;  %v1736_v48 = vrot.slane %v1365_v39, %v5113_v41  ;;  %v1793_v32 = vcombine.high %v1785_v16, %v1785_v16  ;;  %v1801_v39 = vrot.slane %v1785_v16, %v5113_v41 }
 0x381   : > { %v1743_v50 = vrot.slane %v1729_v42, %v5113_v41  ;;  %v1744_v61 = vcombine.high %v1736_v48, %v1736_v48  ;;  %v1752_v62 = vrot.slane %v1736_v48, %v5113_v41  ;;  %v4230_v48 = vpop.f32.mrf.mxu1 }
 0x383   : > { %v1745_v3 = vcombine.high %v1743_v50, %v1743_v50  ;;  %v1766_v4 = vrot.slane %v1744_v61, %v5113_v41  ;;  %v1774_v5 = vcombine.high %v1752_v62, %v1752_v62  ;;  %v1759_v7 = vrot.slane %v1743_v50, %v5113_v41 }
 0x384   : > { %v1830_v8 = vrot.slane %v1752_v62, %v5125_v0  ;;  %v1792_v50 = vrot.slane %v1778_v30, %v5113_v41  ;;  %v1815_v61 = vrot.slane %v1793_v32, %v5113_v41 }
 0x385   : > { %v1776_v10 = vcombine.high %v1766_v4, %v1766_v4  ;;  %v1834_v11 = vrot.slane %v1766_v4, %v5125_v0  ;;  %v1838_v14 = vrot.slane %v1774_v5, %v5125_v0  ;;  %v1773_v17 = vrot.slane %v1745_v3, %v5113_v41 }
 0x386   : > { %v1907_v13 = vmul.f32 %v1830_v8, %v1493_v6  ;;  %v1775_v26 = vcombine.high %v1759_v7, %v1759_v7  ;;  %v1846_v27 = vrot.slane %v1759_v7, %v5125_v0  ;;  %v1823_v3 = vcombine.high %v1801_v39, %v1801_v39  ;;  %v1552_v6 = vpop.f32.mrf.mxu1 }
 0x387   : > { %v1908_v18 = vmul.f32 %v1834_v11, %v1498_v9  ;;  %v1842_v21 = vrot.slane %v1776_v10, %v5125_v0  ;;  %v1909_v20 = vmul.f32 %v1838_v14, %v1503_v12  ;;  %v1850_v34 = vrot.slane %v1773_v17, %v5125_v0 }
 0x388   : > { %4278 = vmatprep.mubr.msk.f32.mxu1 %vm1929_vm3, %v1907_v13  ;;  %v1777_v37 = vcombine.high %v1773_v17, %v1773_v17  ;;  %v1911_v42 = vmul.f32 %v1846_v27, %v1513_v23  ;;  %v1854_v46 = vrot.slane %v1775_v26, %v5125_v0  ;;  %v1862_v4 = vrot.slane %v1801_v39, %v5125_v0  ;;  %v4233_v14 = vpop.f32.mrf.mxu1 }
 0x389   : > { %4279 = vmatmul.mubr.msk.f32.vlgmr.msra.gmra.mxu1 %vm1929_vm3, %v1908_v18  ;;  %v1910_v33 = vmul.f32 %v1842_v21, %v1508_v28  ;;  %v1912_v62 = vmul.f32 %v1850_v34, %v1518_v22  ;;  %v1794_v7 = vcombine.high %v1792_v50, %v1792_v50  ;;  %v1825_v8 = vcombine.high %v1815_v61, %v1815_v61 }
 0x38a   : > { %4281 = vmatprep.mubr.msk.f32.mxu1 %vm1929_vm3, %v1909_v20  ;;  %v1858_v2 = vrot.slane %v1777_v37, %v5125_v0  ;;  %v1913_v5 = vmul.f32 %v1854_v46, %v1523_v25  ;;  %v1866_v10 = vrot.slane %v1815_v61, %v5125_v0  ;;  %v1808_v11 = vrot.slane %v1792_v50, %v5113_v41  ;;  %v1562_v28 = vpop.f32.mrf.mxu1 }
 0x38b   : > { %v1915_v12 = vmul.f32 %v1862_v4, %v1533_v35  ;;  %v1870_v13 = vrot.slane %v1823_v3, %v5125_v0  ;;  %v1822_v16 = vrot.slane %v1794_v7, %v5113_v41  ;;  %v1874_v18 = vrot.slane %v1825_v8, %v5125_v0 }
 0x38c   : > { %v1914_v9 = vmul.f32 %v1858_v2, %v1528_v24  ;;  %v1916_v17 = vmul.f32 %v1866_v10, %v1538_v29  ;;  %v1824_v21 = vcombine.high %v1808_v11, %v1808_v11  ;;  %v1878_v20 = vrot.slane %v1808_v11, %v5125_v0 }
 0x38d   : > { %4282 = vmatmul.mubr.msk.f32.gmra.mxu1 %vm1929_vm3, %v1910_v33  ;;  %v1917_v26 = vmul.f32 %v1870_v13, %v1543_v1  ;;  %v1548_v27 = vadd.f32 %v4227_v15, %v5123_v63  ;;  %v1553_v44 = vadd.f32 %v5123_v63, %v1552_v6  ;;  %v1882_v30 = vrot.slane %v1822_v16, %v5125_v0 }
 0x38e   : > { %4284 = vmatprep.mubr.msk.f32.mxu1 %vm1929_vm3, %v1911_v42  ;;  %v1826_v31 = vcombine.high %v1822_v16, %v1822_v16  ;;  %v1886_v33 = vrot.slane %v1824_v21, %v5125_v0  ;;  %v1558_v34 = vadd.f32 %v4230_v48, %v5123_v63  ;;  %v1563_v15 = vadd.f32 %v5123_v63, %v1562_v28 }
 0x38f   : > { %v1918_v23 = vmul.f32 %v1874_v18, %v1548_v27  ;;  %v1919_v32 = vmul.f32 %v1878_v20, %v1553_v44  ;;  %v1568_v46 = vadd.f32 %v4233_v14, %v5123_v63 }
 0x390   : > { %v1920_v37 = vmul.f32 %v1882_v30, %v1558_v34  ;;  %v1890_v39 = vrot.slane %v1826_v31, %v5125_v0  ;;  %v1921_v42 = vmul.f32 %v1886_v33, %v1563_v15 }
 0x391   : > { %4285 = vmatmul.mubr.msk.f32.gmra.mxu1 %vm1929_vm3, %v1912_v62 }
 0x392   : > { %4287 = vmatprep.mubr.msk.f32.mxu1 %vm1929_vm3, %v1913_v5  ;;  %v1922_v22 = vmul.f32 %v1890_v39, %v1568_v46 }
 0x395   : > { %4288 = vmatmul.mubr.msk.f32.gmra.mxu1 %vm1929_vm3, %v1914_v9 }
 0x396   : > { %4290 = vmatprep.mubr.msk.f32.mxu1 %vm1929_vm3, %v1915_v12 }
 0x399   : > { %4291 = vmatmul.mubr.msk.f32.gmra.mxu1 %vm1929_vm3, %v1916_v17 }
 0x39a   : > { %4293 = vmatprep.mubr.msk.f32.mxu1 %vm1929_vm3, %v1917_v26 }
 0x39d   : > { %4294 = vmatmul.mubr.msk.f32.gmra.mxu1 %vm1929_vm3, %v1918_v23 }
 0x39e   : > { %4296 = vmatprep.mubr.msk.f32.mxu1 %vm1929_vm3, %v1919_v32 }
 0x3a1   : > { %4297 = vmatmul.mubr.msk.f32.gmra.mxu1 %vm1929_vm3, %v1920_v37 }
 0x3a2   : > { %4299 = vmatprep.mubr.msk.f32.mxu1 %vm1929_vm3, %v1921_v42 }
 0x3a5   : > { %4300 = vmatmul.mubr.msk.f32.gmra.mxu1 %vm1929_vm3, %v1922_v22 }
 0x3a6   : > { %4395 = vmatprep.mubr.f32.mxu1 %v4901_v19 }
 0x449   : > { %v5187_v25 = vpop.f32.mrf.mxu1 }
 0x44a   : > { %v2125_v12 = vsel %vm2123_vm4, %v5187_v25, -inf }
 0x44b   : > { %v5189_v48 = vpop.f32.mrf.mxu1 }
 0x44c   : > { %v2124_v6 = vsel %vm2123_vm4, %v5189_v48, -inf }
 0x44d   : > { %v5191_v50 = vpop.f32.mrf.mxu1 }
 0x44e   : > { %v2127_v13 = vsel %vm2123_vm4, %v5191_v50, -inf }
 0x44f   : > { %v5193_v61 = vpop.f32.mrf.mxu1 }
 0x450   : > { %v2126_v29 = vsel %vm2123_vm4, %v5193_v61, -inf }
 0x451   : > { %v5195_v62 = vpop.f32.mrf.mxu1 }
 0x452   : > { %v2130_v8 = vsel %vm2123_vm4, %v5195_v62, -inf }
 0x453   : > { %v5197_v63 = vpop.f32.mrf.mxu1  ;;  %v2131_v26 = vmax.f32 %v2125_v12, %v2130_v8 }
 0x454   : > { %v2128_v35 = vsel %vm2123_vm4, %v5197_v63, -inf }
 0x455   : > { %v5199_v2 = vpop.f32.mrf.mxu1  ;;  %v2129_v1 = vmax.f32 %v2124_v6, %v2128_v35 }
 0x456   : > { %v2134_v9 = vsel %vm2123_vm4, %v5199_v2, -inf }
 0x457   : > { %v5201_v3 = vpop.f32.mrf.mxu1  ;;  %v2135_v20 = vmax.f32 %v2127_v13, %v2134_v9 }
 0x458   : > { %v2132_v10 = vsel %vm2123_vm4, %v5201_v3, -inf }
 0x459   : > { %v5203_v4 = vpop.f32.mrf.mxu1  ;;  %v2133_v27 = vmax.f32 %v2126_v29, %v2132_v10 }
 0x45a   : > { %v2138_v16 = vsel %vm2123_vm4, %v5203_v4, -inf }
 0x45b   : > { %v5205_v5 = vpop.f32.mrf.mxu1  ;;  %v2139_v31 = vmax.f32 %v2131_v26, %v2138_v16 }
 0x45c   : > { %v2136_v11 = vsel %vm2123_vm4, %v5205_v5, -inf }
 0x45d   : > { %v4295_v19 = vpop.f32.mrf.mxu1  ;;  %v2137_v44 = vmax.f32 %v2129_v1, %v2136_v11 }
 0x45e   : > { %v2142_v17 = vsel %vm2123_vm4, %v4295_v19, -inf }
 0x45f   : > { %v2094_v24 = vpop.f32.mrf.mxu1  ;;  %v2143_v32 = vmax.f32 %v2135_v20, %v2142_v17 }
 0x460   : > { %v2140_v18 = vsel %vm2123_vm4, %v2094_v24, -inf }
 0x461   : > { %v4298_v7 = vpop.f32.mrf.mxu1  ;;  %v2141_v33 = vmax.f32 %v2133_v27, %v2140_v18 }
 0x462   : > { %v2146_v23 = vsel %vm2123_vm4, %v4298_v7, -inf }
 0x463   : > { %v2104_v14 = vpop.f32.mrf.mxu1  ;;  %v2147_v39 = vmax.f32 %v2139_v31, %v2146_v23 }
 0x464   : > { %v2144_v21 = vsel %vm2123_vm4, %v2104_v14, -inf }
 0x465   : > { %v4301_v28 = vpop.f32.mrf.mxu1  ;;  %v2145_v34 = vmax.f32 %v2137_v44, %v2144_v21 }
 0x466   : > { %v2150_v30 = vsel %vm2123_vm4, %v4301_v28, -inf }
 0x467   : > { %v2114_v15 = vpop.f32.mrf.mxu1  ;;  %v2151_v42 = vmax.f32 %v2143_v32, %v2150_v30  ;;  %v2152_v22 = vmax.f32 %v2145_v34, %v2147_v39 }
 0x468   : > { %v2148_v37 = vsel %vm2123_vm4, %v2114_v15, -inf }
 0x469   : > { %v2149_v46 = vmax.f32 %v2141_v33, %v2148_v37 }
 0x46b   : > { %v2153_v35 = vmax.f32 %v2149_v46, %v2151_v42 }
 0x46d   : > { %v2154_v6 = vmax.f32 %v2152_v22, %v2153_v35 }
 0x46f   : > { %v2155_v8 = vrot.slane %v2154_v6, 4 }
 0x471   : > { %v2156_v9 = vmax.f32 %v2154_v6, %v2155_v8 }
 0x473   : > { %v2157_v10 = vrot.slane %v2156_v9, 2 }
 0x475   : > { %v2158_v11 = vmax.f32 %v2156_v9, %v2157_v10 }
 0x477   : > { %v2159_v12 = vrot.slane %v2158_v11, 1 }
 0x479   : > { %v5233_v13 = vmax.f32 %v2158_v11, %v2159_v12 }
 0x47b   : > { %v2175_v29 = vsub.f32 %v2114_v15, %v5233_v13  ;;  %v2176_v1 = vsub.f32 %v4301_v28, %v5233_v13  ;;  %v2174_v16 = vsub.f32 %v4298_v7, %v5233_v13  ;;  %v2173_v21 = vsub.f32 %v2104_v14, %v5233_v13 }
 0x47c   : > { %v2172_v20 = vsub.f32 %v4295_v19, %v5233_v13  ;;  %v2171_v44 = vsub.f32 %v2094_v24, %v5233_v13  ;;  %v2170_v30 = vsub.f32 %v5203_v4, %v5233_v13  ;;  %v2169_v7 = vsub.f32 %v5205_v5, %v5233_v13 }
 0x47d   : > { %v2207_v17 = vmul.f32 1.442695, %v2176_v1  ;;  %v2205_v18 = vmul.f32 1.442695, %v2175_v29  ;;  %v2203_v26 = vmul.f32 1.442695, %v2174_v16  ;;  %v2168_v31 = vsub.f32 %v5199_v2, %v5233_v13 }
 0x47e   : > { %v2201_v27 = vmul.f32 1.442695, %v2173_v21  ;;  %v2199_v23 = vmul.f32 1.442695, %v2172_v20  ;;  %v2197_v28 = vmul.f32 1.442695, %v2171_v44  ;;  %v2167_v24 = vsub.f32 %v5201_v3, %v5233_v13  ;;  %v5322_v21 = vpop.f32.mrf.mxu0 }
 0x47f   : > { %4523 = vpow2.f32 %v2207_v17  ;;  %v2195_v14 = vmul.f32 1.442695, %v2170_v30  ;;  %v2193_v19 = vmul.f32 1.442695, %v2169_v7  ;;  %v2191_v32 = vmul.f32 1.442695, %v2168_v31 }
 0x480   : > { %4525 = vpow2.f32 %v2205_v18  ;;  %v2166_v4 = vsub.f32 %v5195_v62, %v5233_v13  ;;  %v2189_v5 = vmul.f32 1.442695, %v2167_v24  ;;  %v2165_v34 = vsub.f32 %v5197_v63, %v5233_v13  ;;  %v2482_v17 = vld [vmem:[%s5888_s5] sm:$0x7]  ;;  %v2774_v18 = vld [vmem:[%s5857_s16 + $0x18] sm:$0xff]  ;;  %5889 = vst [vmem:[#allocation7_spill] sm:$0xff] %v5322_v21 }
 0x481   : > { %4527 = vpow2.f32 %v2203_v26  ;;  %v2164_v62 = vsub.f32 %v5191_v50, %v5233_v13  ;;  %v2163_v63 = vsub.f32 %v5193_v61, %v5233_v13  ;;  %v2162_v50 = vsub.f32 %v5187_v25, %v5233_v13  ;;  %v5324_v26 = vpop.f32.mrf.mxu0  ;;  %s3616_s5 = scalar_lea.sflag [#allocation3], %s621_s27 }
 0x482   : > { %4529 = vpow2.f32 %v2201_v27  ;;  %v2187_v3 = vmul.f32 1.442695, %v2166_v4  ;;  %v2185_v37 = vmul.f32 1.442695, %v2165_v34  ;;  %v2161_v61 = vsub.f32 %v5189_v48, %v5233_v13  ;;  %5890 = vst [vmem:[#allocation8_spill] sm:$0xff] %v5324_v26 }
 0x483   : > { %4531 = vpow2.f32 %v2199_v23  ;;  %v2183_v42 = vmul.f32 1.442695, %v2164_v62  ;;  %v2181_v22 = vmul.f32 1.442695, %v2163_v63  ;;  %v2179_v6 = vmul.f32 1.442695, %v2162_v50  ;;  %v5326_v20 = vpop.f32.mrf.mxu0 }
 0x484   : > { %4533 = vpow2.f32 %v2197_v28  ;;  %v2177_v8 = vmul.f32 1.442695, %v2161_v61  ;;  %5891 = vst [vmem:[#allocation9_spill] sm:$0xff] %v5326_v20 }
 0x485   : > { %4535 = vpow2.f32 %v2195_v14 }
 0x486   : > { %4537 = vpow2.f32 %v2193_v19 }
 0x487   : > { %4539 = vpow2.f32 %v2191_v32 }
 0x488   : > { %4541 = vpow2.f32 %v2189_v5 }
 0x489   : > { %4543 = vpow2.f32 %v2187_v3 }
 0x48a   : > { %4545 = vpow2.f32 %v2185_v37 }
 0x48b   : > { %4547 = vpow2.f32 %v2183_v42 }
 0x48c   : > { %v5251_v33 = vpop.eup %4523  ;;  %4549 = vpow2.f32 %v2181_v22 }
 0x48d   : > { %4302 = vmatprep.subr.mxu0 %v5251_v33  ;;  %v5256_v2 = vpop.eup %4525  ;;  %4551 = vpow2.f32 %v2179_v6 }
 0x48e   : > { %4303 = vmatpush3.msra.mxu0 %v5251_v33  ;;  %v5262_v15 = vpop.eup %4527  ;;  %4553 = vpow2.f32 %v2177_v8 }
 0x48f   : > { %4304 = vmatprep.subr.mxu0 %v5256_v2  ;;  %v5268_v39 = vpop.eup %4529 }
 0x490   : > { %4305 = vmatpush3.msra.mxu0 %v5256_v2  ;;  %v5274_v46 = vpop.eup %4531 }
 0x491   : > { %4306 = vmatprep.subr.mxu0 %v5262_v15  ;;  %v5280_v35 = vpop.eup %4533 }
 0x492   : > { %4307 = vmatpush3.msra.mxu0 %v5262_v15  ;;  %v5284_v25 = vpop.eup %4535 }
 0x493   : > { %4308 = vmatprep.subr.mxu0 %v5268_v39  ;;  %v5288_v9 = vpop.eup %4537 }
 0x494   : > { %4309 = vmatpush3.msra.mxu0 %v5268_v39  ;;  %v5292_v48 = vpop.eup %4539 }
 0x495   : > { %4310 = vmatprep.subr.mxu0 %v5274_v46  ;;  %v5296_v10 = vpop.eup %4541 }
 0x496   : > { %4311 = vmatpush3.msra.mxu0 %v5274_v46  ;;  %v5300_v11 = vpop.eup %4543 }
 0x497   : > { %4312 = vmatprep.subr.mxu0 %v5280_v35  ;;  %v5304_v12 = vpop.eup %4545 }
 0x498   : > { %4313 = vmatpush3.msra.mxu0 %v5280_v35  ;;  %v5308_v13 = vpop.eup %4547 }
 0x499   : > { %4314 = vmatprep.subr.mxu0 %v5284_v25  ;;  %v4550_v29 = vpop.eup %4549 }
 0x49a   : > { %4315 = vmatpush3.msra.mxu0 %v5284_v25  ;;  %v4552_v1 = vpop.eup %4551 }
 0x49b   : > { %4316 = vmatprep.subr.mxu0 %v5288_v9  ;;  %v4554_v16 = vpop.eup %4553 }
 0x49c   : > { %4317 = vmatpush3.msra.mxu0 %v5288_v9 }
 0x49d   : > { %4318 = vmatprep.subr.mxu0 %v5292_v48 }
 0x49e   : > { %4319 = vmatpush3.msra.mxu0 %v5292_v48 }
 0x49f   : > { %4320 = vmatprep.subr.mxu0 %v5296_v10 }
 0x4a0   : > { %4321 = vmatpush3.msra.mxu0 %v5296_v10 }
 0x4a1   : > { %4322 = vmatprep.subr.mxu0 %v5300_v11 }
 0x4a2   : > { %4323 = vmatpush3.msra.mxu0 %v5300_v11 }
 0x4a3   : > { %4324 = vmatprep.subr.mxu0 %v5304_v12 }
 0x4a4   : > { %4325 = vmatpush3.msra.mxu0 %v5304_v12 }
 0x4a5   : > { %4326 = vmatprep.subr.mxu0 %v5308_v13 }
 0x4a6   : > { %4327 = vmatpush3.msra.mxu0 %v5308_v13 }
 0x4a7   : > { %4328 = vmatprep.subr.mxu0 %v4550_v29 }
 0x4a8   : > { %4329 = vmatpush3.msra.mxu0 %v4550_v29 }
 0x4a9   : > { %4330 = vmatprep.subr.mxu0 %v4552_v1 }
 0x4aa   : > { %4331 = vmatpush3.msra.mxu0 %v4552_v1 }
 0x4ab   : > { %4332 = vmatprep.subr.mxu0 %v4554_v16 }
 0x4ac   : > { %4333 = vmatpush3.msra.mxu0 %v4554_v16 }
 0x4ad   : > { %4335 = vmatmul.mubr.f32.vlgmr.msra.gmra.mxu0 %v5010_v60  ;;  %4337 = vmatprep.subr.msk.mxu0 %vm2531_vm5, %v2482_v17  ;;  %v5328_v60 = vpop.f32.mrf.mxu0 }
 0x4ae   : > { %4338 = vmatpush3.msk.msra.mxu0 %vm2531_vm5, %v2482_v17  ;;  %5892 = vst [vmem:[#allocation10_spill] sm:$0xff] %v5328_v60 }
 0x4af   : > { %4398 = vmatprep.subr.mxu0 %v2774_v18  ;;  %v5330_v27 = vpop.f32.mrf.mxu0 }
 0x4b1   : > { %v5332_v44 = vpop.f32.mrf.mxu0 }
 0x4b2   : > { %5893 = vst [vmem:[#allocation11_spill] sm:$0xff] %v5332_v44 }
 0x4b3   : > { %v5334_v23 = vpop.f32.mrf.mxu0 }
 0x4b5   : > { %v5336_v30 = vpop.f32.mrf.mxu0 }
 0x4b7   : > { %v5338_v28 = vpop.f32.mrf.mxu0 }
 0x4b9   : > { %v5340_v7 = vpop.f32.mrf.mxu0 }
 0x4bb   : > { %v5342_v14 = vpop.f32.mrf.mxu0 }
 0x4bd   : > { %v5344_v31 = vpop.f32.mrf.mxu0 }
 0x4bf   : > { %v5346_v19 = vpop.f32.mrf.mxu0 }
 0x4c1   : > { %v5348_v24 = vpop.f32.mrf.mxu0 }
 0x4c3   : > { %v5350_v32 = vpop.f32.mrf.mxu0 }
 0x4c5   : > { %v5352_v4 = vpop.f32.mrf.mxu0 }
 0x56d   : > { %v4336_v5 = vpop.f32.mrf.mxu0 }
 0x56f   : > { %v2275_v34 = vpop.f32.mrf.mxu0 }
 0x570   : > { %4555 = vrcp.f32 %v2275_v34 }
 0x571   : > { %4557 = vrcp.f32 %v4336_v5 }
 0x57d   : > { %v4556_v3 = vpop.eup %4555 }
 0x57e   : > { %v2288_v62 = vcombine.high %v4556_v3, %v4556_v3  ;;  %v2295_v37 = vrot.slane %v4556_v3, %v5113_v41  ;;  %v4558_v22 = vpop.eup %4557 }
 0x57f   : > { %v2344_v60 = vrot.slane %v4558_v22, %v5113_v41 }
 0x580   : > { %v2303_v63 = vcombine.high %v2295_v37, %v2295_v37  ;;  %v2311_v42 = vrot.slane %v2295_v37, %v5113_v41  ;;  %v2302_v50 = vrot.slane %v2288_v62, %v5113_v41 }
 0x582   : > { %v2389_v61 = vrot.slane %v2311_v42, %v5125_v0  ;;  %v2325_v6 = vrot.slane %v2303_v63, %v5113_v41  ;;  %v2333_v8 = vcombine.high %v2311_v42, %v2311_v42  ;;  %v2318_v17 = vrot.slane %v2302_v50, %v5113_v41 }
 0x583   : > { %v2304_v26 = vcombine.high %v2302_v50, %v2302_v50  ;;  %v2337_v50 = vcombine.high %v4558_v22, %v4558_v22  ;;  %v2772_v22 = vld [vmem:[%s5857_s16 + $0x8] sm:$0xff] }
 0x584   : > { %v2466_v34 = vmul.f32 %v4554_v16, %v2389_v61  ;;  %v2393_v5 = vrot.slane %v2325_v6, %v5125_v0  ;;  %v2397_v21 = vrot.slane %v2333_v8, %v5125_v0  ;;  %v2335_v3 = vcombine.high %v2325_v6, %v2325_v6  ;;  %v2773_v16 = vld [vmem:[%s5857_s16 + $0x10] sm:$0xff] }
 0x585   : > { %v2332_v63 = vrot.slane %v2304_v26, %v5113_v41  ;;  %v2405_v42 = vrot.slane %v2318_v17, %v5125_v0  ;;  %v2334_v44 = vcombine.high %v2318_v17, %v2318_v17  ;;  %v2360_v8 = vrot.slane %v2344_v60, %v5113_v41 }
 0x586   : > { %4339 = vmatprep.mubr.msk.f32.mxu0 %vm2123_vm4, %v2466_v34  ;;  %v2467_v62 = vmul.f32 %v4552_v1, %v2393_v5  ;;  %v2468_v37 = vmul.f32 %v4550_v29, %v2397_v21  ;;  %v2401_v20 = vrot.slane %v2335_v3, %v5125_v0  ;;  %v2352_v21 = vcombine.high %v2344_v60, %v2344_v60 }
 0x587   : > { %v2409_v29 = vrot.slane %v2332_v63, %v5125_v0  ;;  %v2336_v1 = vcombine.high %v2332_v63, %v2332_v63  ;;  %v2470_v26 = vmul.f32 %v5304_v12, %v2405_v42  ;;  %v2413_v6 = vrot.slane %v2334_v44, %v5125_v0 }
 0x588   : > { %4340 = vmatmul.mubr.msk.f32.vlgmr.msra.gmra.mxu0 %vm2123_vm4, %v2467_v62  ;;  %v2469_v61 = vmul.f32 %v5308_v13, %v2401_v20  ;;  %v2771_v13 = vld [vmem:[%s5857_s16] sm:$0xff]  ;;  %v2374_v20 = vrot.slane %v2352_v21, %v5113_v41  ;;  %v2351_v60 = vrot.slane %v2337_v50, %v5113_v41  ;;  %v2421_v17 = vrot.slane %v2360_v8, %v5125_v0 }
 0x589   : > { %4342 = vmatprep.mubr.msk.f32.mxu0 %vm2123_vm4, %v2468_v37  ;;  %4399 = vmatpush3.msra.mxu0 %v2774_v18  ;;  %v2471_v12 = vmul.f32 %v5300_v11, %v2409_v29  ;;  %v2417_v18 = vrot.slane %v2336_v1, %v5125_v0  ;;  %v2472_v44 = vmul.f32 %v5296_v10, %v2413_v6 }
 0x58a   : > { %4400 = vmatprep.subr.mxu0 %v2773_v16  ;;  %v2382_v34 = vcombine.high %v2360_v8, %v2360_v8  ;;  %v2425_v5 = vrot.slane %v2374_v20, %v5125_v0  ;;  %v2384_v3 = vcombine.high %v2374_v20, %v2374_v20  ;;  %v2353_v62 = vcombine.high %v2351_v60, %v2351_v60 }
 0x58b   : > { %4401 = vmatpush3.msra.mxu0 %v2773_v16  ;;  %v2473_v11 = vmul.f32 %v5292_v48, %v2417_v18  ;;  %v2474_v37 = vmul.f32 %v5288_v9, %v2421_v17  ;;  %v2367_v63 = vrot.slane %v2351_v60, %v5113_v41 }
 0x58c   : > { %4343 = vmatmul.mubr.msk.f32.gmra.mxu0 %vm2123_vm4, %v2469_v61  ;;  %4402 = vmatprep.subr.mxu0 %v2772_v22  ;;  %v2429_v10 = vrot.slane %v2382_v34, %v5125_v0  ;;  %v2475_v42 = vmul.f32 %v5284_v25, %v2425_v5  ;;  %v2433_v16 = vrot.slane %v2384_v3, %v5125_v0 }
 0x58d   : > { %4345 = vmatprep.mubr.msk.f32.mxu0 %vm2123_vm4, %v2470_v26  ;;  %4403 = vmatpush3.msra.mxu0 %v2772_v22  ;;  %v2381_v48 = vrot.slane %v2353_v62, %v5113_v41  ;;  %v2437_v61 = vrot.slane %v2367_v63, %v5125_v0  ;;  %v2383_v29 = vcombine.high %v2367_v63, %v2367_v63  ;;  %v5478_v22 = vld [vmem:[%s5858_s17] ss:$0 sm:$0xff] }
 0x58e   : > { %4404 = vmatprep.subr.mxu0 %v2771_v13  ;;  %v2476_v50 = vmul.f32 %v5280_v35, %v2429_v10  ;;  %v2477_v9 = vmul.f32 %v5274_v46, %v2433_v16 }
 0x58f   : > { %4405 = vmatpush3.msra.mxu0 %v2771_v13  ;;  %v2441_v1 = vrot.slane %v2381_v48, %v5125_v0  ;;  %v2385_v21 = vcombine.high %v2381_v48, %v2381_v48  ;;  %v2478_v25 = vmul.f32 %v5268_v39, %v2437_v61  ;;  %v2445_v26 = vrot.slane %v2383_v29, %v5125_v0 }
 0x590   : > { %4346 = vmatmul.mubr.msk.f32.gmra.mxu0 %vm2123_vm4, %v2471_v12 }
 0x591   : > { %4348 = vmatprep.mubr.msk.f32.mxu0 %vm2123_vm4, %v2472_v44  ;;  %v2479_v35 = vmul.f32 %v5262_v15, %v2441_v1  ;;  %v2449_v6 = vrot.slane %v2385_v21, %v5125_v0  ;;  %v2480_v8 = vmul.f32 %v5256_v2, %v2445_v26  ;;  %v5895_v21 = vld [vmem:[#allocation9_spill] sm:$0xff] }
 0x593   : > { %v2481_v46 = vmul.f32 %v5251_v33, %v2449_v6 }
 0x594   : > { %4349 = vmatmul.mubr.msk.f32.gmra.mxu0 %vm2123_vm4, %v2473_v11 }
 0x595   : > { %4351 = vmatprep.mubr.msk.f32.mxu0 %vm2123_vm4, %v2474_v37 }
 0x598   : > { %4352 = vmatmul.mubr.msk.f32.gmra.mxu0 %vm2123_vm4, %v2475_v42 }
 0x599   : > { %4354 = vmatprep.mubr.msk.f32.mxu0 %vm2123_vm4, %v2476_v50 }
 0x59c   : > { %4355 = vmatmul.mubr.msk.f32.gmra.mxu0 %vm2123_vm4, %v2477_v9 }
 0x59d   : > { %4357 = vmatprep.mubr.msk.f32.mxu0 %vm2123_vm4, %v2478_v25 }
 0x5a0   : > { %4358 = vmatmul.mubr.msk.f32.gmra.mxu0 %vm2123_vm4, %v2479_v35  ;;  %v5896_v35 = vld [vmem:[#allocation10_spill] sm:$0xff] }
 0x5a1   : > { %4360 = vmatprep.mubr.msk.f32.mxu0 %vm2123_vm4, %v2480_v8 }
 0x5a4   : > { %4361 = vmatmul.mubr.msk.f32.gmra.mxu0 %vm2123_vm4, %v2481_v46 }
 0x5a5   : > { %4406 = vmatprep.mubr.msk.f32.mxu0 %vm899_vm2, %v4935_v47 }
 0x5a8   : > { %4407 = vmatmul.mubr.msk.f32.vlgmr.msra.gmra.mxu0 %vm899_vm2, %v4956_v52 }
 0x5a9   : > { %4409 = vmatprep.mubr.msk.f32.mxu0 %vm899_vm2, %v4961_v54 }
 0x5ac   : > { %4410 = vmatmul.mubr.msk.f32.gmra.mxu0 %vm899_vm2, %v4972_v56 }
 0x5ad   : > { %4412 = vmatprep.mubr.msk.f32.mxu0 %vm899_vm2, %v4977_v58 }
 0x5b0   : > { %4413 = vmatmul.mubr.msk.f32.gmra.mxu0 %vm899_vm2, %v4981_v59 }
 0x5b1   : > { %4415 = vmatprep.mubr.msk.f32.mxu0 %vm899_vm2, %v4974_v57  ;;  %v5469_v57 = vld [vmem:[%s5856_s15] ss:$0 sm:$0xff] }
 0x5b2   : > { %v1724_v59 = vadd.f32 %v5350_v32, %v5469_v57  ;;  %v1719_v2 = vadd.f32 %v5469_v57, %v5352_v4  ;;  %v1714_v12 = vadd.f32 %v5346_v19, %v5469_v57  ;;  %v1709_v4 = vadd.f32 %v5469_v57, %v5348_v24 }
 0x5b3   : > { %v1704_v19 = vadd.f32 %v5342_v14, %v5469_v57  ;;  %v1699_v24 = vadd.f32 %v5469_v57, %v5344_v31  ;;  %v1694_v14 = vadd.f32 %v5338_v28, %v5469_v57  ;;  %v1689_v31 = vadd.f32 %v5469_v57, %v5340_v7 }
 0x5b4   : > { %4416 = vmatmul.mubr.msk.f32.gmra.mxu0 %vm899_vm2, %v4964_v55  ;;  %v1684_v28 = vadd.f32 %v5334_v23, %v5469_v57  ;;  %v1679_v7 = vadd.f32 %v5469_v57, %v5336_v30  ;;  %v1674_v50 = vadd.f32 %v5330_v27, %v5469_v57  ;;  %v5894_v30 = vld [vmem:[#allocation11_spill] sm:$0xff]  ;;  %v1664_v25 = vadd.f32 %v5895_v21, %v5469_v57 }
 0x5b5   : > { %4418 = vmatprep.mubr.msk.f32.mxu0 %vm899_vm2, %v4958_v53  ;;  %v1669_v29 = vadd.f32 %v5469_v57, %v5894_v30  ;;  %v1659_v6 = vadd.f32 %v5469_v57, %v5896_v35 }
 0x5b8   : > { %4419 = vmatmul.mubr.msk.f32.gmra.mxu0 %vm899_vm2, %v4952_v51 }
 0x5b9   : > { %4421 = vmatprep.mubr.msk.f32.mxu0 %vm899_vm2, %v4944_v49 }
 0x5bc   : > { %4422 = vmatmul.mubr.msk.f32.gmra.mxu0 %vm899_vm2, %v4927_v45 }
 0x5bd   : > { %4424 = vmatprep.mubr.msk.f32.mxu0 %vm899_vm2, %v4921_v43 }
 0x5c0   : > { %4425 = vmatmul.mubr.msk.f32.gmra.mxu0 %vm899_vm2, %v4915_v40 }
 0x5c1   : > { %4427 = vmatprep.mubr.msk.f32.mxu0 %vm899_vm2, %v4911_v38 }
 0x5c4   : > { %4428 = vmatmul.mubr.msk.f32.gmra.mxu0 %vm899_vm2, %v4909_v36 }
 0x648   : > { %v5452_v47 = vpop.f32.mrf.mxu0 }
 0x64a   : > { %v5454_v51 = vpop.f32.mrf.mxu0 }
 0x64c   : > { %v5456_v49 = vpop.f32.mrf.mxu0 }
 0x64d   : > { %v2683_v8 = vmul.f32 %v5456_v49, %v1664_v25  ;;  %v5898_v49 = vld [vmem:[#allocation8_spill] sm:$0xff] }
 0x64e   : > { %v5458_v52 = vpop.f32.mrf.mxu0 }
 0x650   : > { %v5460_v45 = vpop.f32.mrf.mxu0 }
 0x651   : > { %v2685_v9 = vmul.f32 %v5460_v45, %v1674_v50  ;;  %v5897_v45 = vld [vmem:[#allocation7_spill] sm:$0xff] }
 0x652   : > { %v5462_v43 = vpop.f32.mrf.mxu0 }
 0x653   : > { %v2684_v26 = vmul.f32 %v5462_v43, %v1669_v29  ;;  %v2682_v43 = vmul.f32 %v5458_v52, %v1659_v6 }
 0x654   : > { %v4350_v53 = vpop.f32.mrf.mxu0 }
 0x655   : > { %v2687_v16 = vmul.f32 %v4350_v53, %v1684_v28  ;;  %v1654_v53 = vadd.f32 %v5897_v45, %v5469_v57  ;;  %v3363_v28 = vld [vmem:[%s5899_s25 + $0x8] sm:$0xff] }
 0x656   : > { %v5464_v40 = vpop.f32.mrf.mxu0 }
 0x657   : > { %v2686_v23 = vmul.f32 %v5464_v40, %v1679_v7 }
 0x658   : > { %v4353_v54 = vpop.f32.mrf.mxu0 }
 0x659   : > { %v2689_v37 = vmul.f32 %v4353_v54, %v1694_v14  ;;  %v1649_v54 = vadd.f32 %v5469_v57, %v5898_v49 }
 0x65a   : > { %v2641_v38 = vpop.f32.mrf.mxu0 }
 0x65b   : > { %v2688_v42 = vmul.f32 %v2641_v38, %v1689_v31  ;;  %v2681_v38 = vmul.f32 %v5452_v47, %v1654_v53  ;;  %v2680_v52 = vmul.f32 %v5454_v51, %v1649_v54  ;;  %v4565_v47 = vld [vmem:[%s5885_s6 + $0x8] sm:$0xff]  ;;  %v3366_v31 = vld [vmem:[%s5899_s25 + $0x20] sm:$0xff]  ;;  %s4566_s6 = scalar_lea.vmem %s3630_s26, 64 }
 0x65c   : > { %v4356_v55 = vpop.f32.mrf.mxu0  ;;  %v3822_v54 = vld [vmem:[%s5860_s19] ss:$0 sm:$0xff]  ;;  %p4567_p11 = scmp.ne.s32.totalorder %s3630_s26, %s4566_s6 }
 0x65d   : > { %v2691_v11 = vmul.f32 %v4356_v55, %v1704_v19 }
 0x65e   : > { %v2651_v56 = vpop.f32.mrf.mxu0  ;;  %p4568_p12 = pnand %p4567_p11, %p4775_p5 }
 0x65f   : > { %v2690_v3 = vmul.f32 %v2651_v56, %v1699_v24  ;;  %v2928_v24 = vld [vmem:[%s5859_s18 + $0x8] sm:$0xff] }
 0x660   : > { %v4359_v36 = vpop.f32.mrf.mxu0  ;;  %p4569_p13 = pneg %p4568_p12 }
 0x661   : > { %v2693_v20 = vmul.f32 %v4359_v36, %v1714_v12 }
 0x662   : > { %v2661_v58 = vpop.f32.mrf.mxu0 }
 0x663   : > { %v2692_v44 = vmul.f32 %v2661_v58, %v1709_v4  ;;  %v2932_v4 = vld [vmem:[%s5859_s18 + $0x28] sm:$0xff] }
 0x664   : > { %v4362_v33 = vpop.f32.mrf.mxu0  ;;  %4430 = vmatprep.subr.mxu0 %v2932_v4 }
 0x665   : > { %v2695_v15 = vmul.f32 %v4362_v33, %v1724_v59  ;;  %4431 = vmatpush3.msra.mxu0 %v2932_v4 }
 0x666   : > { %v2671_v39 = vpop.f32.mrf.mxu0 }
 0x667   : > { %v2694_v13 = vmul.f32 %v2671_v39, %v1719_v2  ;;  %4363 = vmatprep.subr.mxu1 %v2695_v15 }
 0x668   : > { %4364 = vmatpush3.msra.mxu1 %v2695_v15  ;;  %v4408_v18 = vpop.f32.mrf.mxu0 }
 0x669   : > { %v5483_v32 = vadd.f32 %v4408_v18, %v5478_v22  ;;  %4365 = vmatprep.subr.mxu1 %v2694_v13 }
 0x66a   : > { %4366 = vmatpush3.msra.mxu1 %v2694_v13  ;;  %v2848_v60 = vpop.f32.mrf.mxu0 }
 0x66b   : > { %3267 = vrot.lane.b32.xlu1 %v5483_v32, %s4629_s30  ;;  %3219 = vrot.lane.b32.xlu0 %v5483_v32, %s4630_s0  ;;  %v5494_v34 = vadd.f32 %v5478_v22, %v2848_v60  ;;  %v2930_v60 = vld [vmem:[%s5859_s18 + $0x18] sm:$0xff] }
 0x66c   : > { %4367 = vmatprep.subr.mxu1 %v2693_v20  ;;  %v4411_v17 = vpop.f32.mrf.mxu0 }
 0x66d   : > { %4368 = vmatpush3.msra.mxu1 %v2693_v20  ;;  %v5505_v62 = vadd.f32 %v4411_v17, %v5478_v22  ;;  %v2931_v20 = vld [vmem:[%s5859_s18 + $0x20] sm:$0xff] }
 0x66e   : > { %4369 = vmatprep.subr.mxu1 %v2692_v44  ;;  %v2858_v5 = vpop.f32.mrf.mxu0  ;;  %4432 = vmatprep.subr.mxu0 %v2931_v20 }
 0x66f   : > { %4370 = vmatpush3.msra.mxu1 %v2692_v44  ;;  %3265 = vrot.lane.b32.xlu1 %v5494_v34, %s4629_s30  ;;  %v5510_v10 = vadd.f32 %v5478_v22, %v2858_v5  ;;  %v2929_v44 = vld [vmem:[%s5859_s18 + $0x10] sm:$0xff] }
 0x670   : > { %3217 = vrot.lane.b32.xlu0 %v5494_v34, %s4630_s0  ;;  %4371 = vmatprep.subr.mxu1 %v2691_v11  ;;  %v4414_v63 = vpop.f32.mrf.mxu0 }
 0x671   : > { %4372 = vmatpush3.msra.mxu1 %v2691_v11  ;;  %v5528_v61 = vadd.f32 %v4414_v63, %v5478_v22  ;;  %4433 = vmatpush3.msra.mxu0 %v2931_v20  ;;  %v3364_v63 = vld [vmem:[%s5899_s25 + $0x10] sm:$0xff] }
 0x672   : > { %4373 = vmatprep.subr.mxu1 %v2690_v3  ;;  %v2868_v48 = vpop.f32.mrf.mxu0  ;;  %4434 = vmatprep.subr.mxu0 %v2930_v60 }
 0x673   : > { %4374 = vmatpush3.msra.mxu1 %v2690_v3  ;;  %3223 = vrot.lane.b32.xlu1 %v5505_v62, %s4630_s0  ;;  %v5534_v1 = vadd.f32 %v5478_v22, %v2868_v48  ;;  %v3367_v3 = vld [vmem:[%s5899_s25 + $0x28] sm:$0xff] }
 0x674   : > { %3221 = vrot.lane.b32.xlu0 %v5510_v10, %s4630_s0  ;;  %4375 = vmatprep.subr.mxu1 %v2689_v37  ;;  %v4417_v27 = vpop.f32.mrf.mxu0 }
 0x675   : > { %4376 = vmatpush3.msra.mxu1 %v2689_v37  ;;  %v5554_v40 = vadd.f32 %v4417_v27, %v5478_v22  ;;  %4435 = vmatpush3.msra.mxu0 %v2930_v60  ;;  %v3365_v37 = vld [vmem:[%s5899_s25 + $0x18] sm:$0xff] }
 0x676   : > { %4377 = vmatprep.subr.mxu1 %v2688_v42  ;;  %v2878_v46 = vpop.f32.mrf.mxu0  ;;  %4436 = vmatprep.subr.mxu0 %v2929_v44 }
 0x677   : > { %4378 = vmatpush3.msra.mxu1 %v2688_v42  ;;  %3271 = vrot.lane.b32.xlu1 %v5505_v62, %s4629_s30  ;;  %v5560_v55 = vadd.f32 %v5478_v22, %v2878_v46  ;;  %v3362_v42 = vld [vmem:[%s5899_s25] sm:$0xff] }
 0x678   : > { %3269 = vrot.lane.b32.xlu0 %v5510_v10, %s4629_s30  ;;  %4379 = vmatprep.subr.mxu1 %v2687_v16  ;;  %v4420_v56 = vpop.f32.mrf.mxu0 }
 0x679   : > { %4380 = vmatpush3.msra.mxu1 %v2687_v16  ;;  %v5575_v51 = vadd.f32 %v4420_v56, %v5478_v22  ;;  %4437 = vmatpush3.msra.mxu0 %v2929_v44 }
 0x67a   : > { %4381 = vmatprep.subr.mxu1 %v2686_v23  ;;  %v2888_v36 = vpop.f32.mrf.mxu0  ;;  %4438 = vmatprep.subr.mxu0 %v2928_v24 }
 0x67b   : > { %4382 = vmatpush3.msra.mxu1 %v2686_v23  ;;  %3227 = vrot.lane.b32.xlu1 %v5528_v61, %s4630_s0  ;;  %v5578_v57 = vadd.f32 %v5478_v22, %v2888_v36 }
 0x67c   : > { %3225 = vrot.lane.b32.xlu0 %v5534_v1, %s4630_s0  ;;  %4383 = vmatprep.subr.mxu1 %v2685_v9  ;;  %v4423_v58 = vpop.f32.mrf.mxu0 }
 0x67d   : > { %4384 = vmatpush3.msra.mxu1 %v2685_v9  ;;  %v5589_v33 = vadd.f32 %v4423_v58, %v5478_v22  ;;  %4439 = vmatpush3.msra.mxu0 %v2928_v24 }
 0x67e   : > { %4385 = vmatprep.subr.mxu1 %v2684_v26  ;;  %v2898_v59 = vpop.f32.mrf.mxu0 }
 0x67f   : > { %4386 = vmatpush3.msra.mxu1 %v2684_v26  ;;  %3275 = vrot.lane.b32.xlu1 %v5528_v61, %s4629_s30  ;;  %v5592_v2 = vadd.f32 %v5478_v22, %v2898_v59 }
 0x680   : > { %3273 = vrot.lane.b32.xlu0 %v5534_v1, %s4629_s30  ;;  %4387 = vmatprep.subr.mxu1 %v2683_v8  ;;  %v4426_v15 = vpop.f32.mrf.mxu0 }
 0x681   : > { %4388 = vmatpush3.msra.mxu1 %v2683_v8  ;;  %v5603_v13 = vadd.f32 %v4426_v15, %v5478_v22 }
 0x682   : > { %4389 = vmatprep.subr.mxu1 %v2682_v43  ;;  %v2908_v39 = vpop.f32.mrf.mxu0 }
 0x683   : > { %4390 = vmatpush3.msra.mxu1 %v2682_v43  ;;  %3231 = vrot.lane.b32.xlu1 %v5554_v40, %s4630_s0  ;;  %v5606_v12 = vadd.f32 %v5478_v22, %v2908_v39 }
 0x684   : > { %3229 = vrot.lane.b32.xlu0 %v5560_v55, %s4630_s0  ;;  %4391 = vmatprep.subr.mxu1 %v2681_v38  ;;  %v4429_v18 = vpop.f32.mrf.mxu0 }
 0x685   : > { %4392 = vmatpush3.msra.mxu1 %v2681_v38  ;;  %v5629_v17 = vadd.f32 %v4429_v18, %v5478_v22 }
 0x686   : > { %4393 = vmatprep.subr.mxu1 %v2680_v52  ;;  %v2918_v19 = vpop.f32.mrf.mxu0 }
 0x687   : > { %4394 = vmatpush3.msra.mxu1 %v2680_v52  ;;  %3279 = vrot.lane.b32.xlu1 %v5554_v40, %s4629_s30  ;;  %v5635_v11 = vadd.f32 %v5478_v22, %v2918_v19  ;;  %v2927_v22 = vld [vmem:[%s5859_s18] sm:$0xff] }
 0x688   : > { %3277 = vrot.lane.b32.xlu0 %v5560_v55, %s4629_s30  ;;  %4396 = vmatmul.mubr.f32.vlgmr.msra.gmra.mxu1 %v4565_v47 }
 0x689   : > { %4440 = vmatprep.subr.mxu0 %v2927_v22  ;;  %4445 = vmatprep.subr.mxu1 %v3367_v3 }
 0x68a   : > { %4441 = vmatpush3.msra.mxu0 %v2927_v22  ;;  %4446 = vmatpush3.msra.mxu1 %v3367_v3 }
 0x68b   : > { %3235 = vrot.lane.b32.xlu1 %v5575_v51, %s4630_s0  ;;  %4447 = vmatprep.subr.mxu1 %v3366_v31 }
 0x68c   : > { %3233 = vrot.lane.b32.xlu0 %v5578_v57, %s4630_s0  ;;  %4448 = vmatpush3.msra.mxu1 %v3366_v31 }
 0x68d   : > { %4449 = vmatprep.subr.mxu1 %v3365_v37 }
 0x68e   : > { %4450 = vmatpush3.msra.mxu1 %v3365_v37 }
 0x68f   : > { %3283 = vrot.lane.b32.xlu1 %v5575_v51, %s4629_s30  ;;  %4451 = vmatprep.subr.mxu1 %v3364_v63 }
 0x690   : > { %3281 = vrot.lane.b32.xlu0 %v5578_v57, %s4629_s30  ;;  %4452 = vmatpush3.msra.mxu1 %v3364_v63 }
 0x691   : > { %4453 = vmatprep.subr.mxu1 %v3363_v28 }
 0x692   : > { %4454 = vmatpush3.msra.mxu1 %v3363_v28 }
 0x693   : > { %3239 = vrot.lane.b32.xlu1 %v5589_v33, %s4630_s0  ;;  %4455 = vmatprep.subr.mxu1 %v3362_v42 }
 0x694   : > { %3237 = vrot.lane.b32.xlu0 %v5592_v2, %s4630_s0  ;;  %4456 = vmatpush3.msra.mxu1 %v3362_v42 }
 0x697   : > { %3287 = vrot.lane.b32.xlu1 %v5589_v33, %s4629_s30 }
 0x698   : > { %3285 = vrot.lane.b32.xlu0 %v5592_v2, %s4629_s30 }
 0x69b   : > { %3243 = vrot.lane.b32.xlu1 %v5603_v13, %s4630_s0 }
 0x69c   : > { %3241 = vrot.lane.b32.xlu0 %v5606_v12, %s4630_s0 }
 0x69f   : > { %3291 = vrot.lane.b32.xlu1 %v5603_v13, %s4629_s30 }
 0x6a0   : > { %3289 = vrot.lane.b32.xlu0 %v5606_v12, %s4629_s30 }
 0x6a3   : > { %3247 = vrot.lane.b32.xlu1 %v5629_v17, %s4630_s0 }
 0x6a4   : > { %3245 = vrot.lane.b32.xlu0 %v5635_v11, %s4630_s0  ;;  %s3842_s0 = sshll.u32 %s4758_s2, 6  ;;  %s4572_s2 = scalar_lea.vmem %s4571_s9, 128 }
 0x6a5   : > { %s3627_s8 = scalar_lea.hbm %s5861_s20, %s3842_s0  ;;  %p4574_p1 = scmp.lt.s32.totalorder %s4572_s2, %s4566_s6 }
 0x6a7   : > { %3295 = vrot.lane.b32.xlu1 %v5629_v17, %s4629_s30  ;;  %p4575_p2 = por %p4574_p1, %p4573_p0 }
 0x6a8   : > { %3293 = vrot.lane.b32.xlu0 %v5635_v11, %s4629_s30 }
 0x6a9   : > { %p4576_p3 = pnand %p4575_p2, %p4569_p13 }
 0x6dd   : > { %v3220_v7 = vpop.permute.xlu0 %3219  ;;  %v3268_v16 = vpop.permute.xlu1 %3267 }
 0x6de   : > { %v3315_v20 = vsel %vm3313_vm6, %v5483_v32, %v3220_v7 }
 0x6df   : > { %v3331_v28 = vsel %vm899_vm2, %v3315_v20, %v3268_v16 }
 0x6e1   : > { %v3266_v50 = vpop.permute.xlu1 %3265 }
 0x6e2   : > { %v3218_v48 = vpop.permute.xlu0 %3217 }
 0x6e3   : > { %v3314_v18 = vsel %vm3313_vm6, %v5494_v34, %v3218_v48 }
 0x6e5   : > { %v3224_v30 = vpop.permute.xlu1 %3223 }
 0x6e6   : > { %v3222_v23 = vpop.permute.xlu0 %3221  ;;  %v3317_v16 = vsel %vm3313_vm6, %v5505_v62, %v3224_v30 }
 0x6e9   : > { %v3272_v9 = vpop.permute.xlu1 %3271 }
 0x6ea   : > { %v3270_v29 = vpop.permute.xlu0 %3269 }
 0x6ed   : > { %v5668_v21 = vpop.permute.xlu1 %3227 }
 0x6ee   : > { %v3226_v27 = vpop.permute.xlu0 %3225 }
 0x6f1   : > { %v5670_v26 = vpop.permute.xlu1 %3275 }
 0x6f2   : > { %v3274_v25 = vpop.permute.xlu0 %3273 }
 0x6f5   : > { %v5674_v6 = vpop.permute.xlu1 %3231 }
 0x6f6   : > { %v5672_v35 = vpop.permute.xlu0 %3229 }
 0x6f9   : > { %v5678_v46 = vpop.permute.xlu1 %3279 }
 0x6fa   : > { %v5676_v8 = vpop.permute.xlu0 %3277 }
 0x6fd   : > { %v5682_v53 = vpop.permute.xlu1 %3235 }
 0x6fe   : > { %v5680_v45 = vpop.permute.xlu0 %3233 }
 0x701   : > { %v5689_v56 = vpop.permute.xlu1 %3283 }
 0x702   : > { %v5684_v43 = vpop.permute.xlu0 %3281 }
 0x705   : > { %v5698_v4 = vpop.permute.xlu1 %3239 }
 0x706   : > { %v5691_v47 = vpop.permute.xlu0 %3237 }
 0x709   : > { %v5715_v48 = vpop.permute.xlu1 %3287 }
 0x70a   : > { %v5707_v3 = vpop.permute.xlu0 %3285 }
 0x748   : > { %v4397_v5 = vpop.f32.mrf.mxu1 }
 0x74a   : > { %v2762_v14 = vpop.f32.mrf.mxu1 }
 0x74b   : > { %4442 = vmatprep.mubr.msk.f32.mxu0 %vm1929_vm3, %v2762_v14  ;;  %v3316_v14 = vsel %vm3313_vm6, %v5510_v10, %v3222_v23 }
 0x74c   : > { %4443 = vmatmul.mubr.msk.f32.vlgmr.msra.gmra.mxu0 %vm1929_vm3, %v4397_v5  ;;  %v3330_v5 = vsel %vm899_vm2, %v3314_v18, %v3266_v50  ;;  %v3332_v42 = vsel %vm899_vm2, %v3316_v14, %v3270_v29  ;;  %v3318_v29 = vsel %vm3313_vm6, %v5534_v1, %v3226_v27  ;;  %v3320_v27 = vsel %vm3313_vm6, %v5560_v55, %v5672_v35 }
 0x80c   : > { %v4444_v49 = vpop.f32.mrf.mxu0 }
 0x80d   : > { %v3018_v60 = vadd.f32 %v4444_v49, %v3822_v54 }
 0x80e   : > { %v3012_v38 = vpop.f32.mrf.mxu0 }
 0x80f   : > { %v3013_v52 = vadd.f32 %v3822_v54, %v3012_v38  ;;  %v3079_v7 = vrot.slane %v3018_v60, %v5113_v41 }
 0x811   : > { %v3023_v36 = vcombine.high %v3013_v52, %v3013_v52  ;;  %v3030_v58 = vrot.slane %v3013_v52, %v5113_v41  ;;  %v3333_v52 = vsel %vm899_vm2, %v3317_v16, %v3272_v9  ;;  %v3095_v62 = vrot.slane %v3079_v7, %v5113_v41 }
 0x812   : > { %v3319_v9 = vsel %vm3313_vm6, %v5528_v61, %v5668_v21 }
 0x813   : > { %v3037_v59 = vrot.slane %v3023_v36, %v5113_v41  ;;  %v3038_v15 = vcombine.high %v3030_v58, %v3030_v58  ;;  %v3046_v39 = vrot.slane %v3030_v58, %v5113_v41  ;;  %v3334_v36 = vsel %vm899_vm2, %v3318_v29, %v3274_v25  ;;  %v3242_v58 = vpop.permute.xlu0 %3241  ;;  %v3244_v25 = vpop.permute.xlu1 %3243 }
 0x814   : > { %v3117_v55 = vcombine.high %v3095_v62, %v3095_v62  ;;  %v3156_v35 = vrot.slane %v3095_v62, %v5125_v0 }
 0x815   : > { %v3039_v19 = vcombine.high %v3037_v59, %v3037_v59  ;;  %v3060_v44 = vrot.slane %v3038_v15, %v5113_v41  ;;  %v3068_v24 = vcombine.high %v3046_v39, %v3046_v39  ;;  %v3124_v22 = vrot.slane %v3046_v39, %v5125_v0 }
 0x816   : > { %v3053_v34 = vrot.slane %v3037_v59, %v5113_v41  ;;  %v3072_v59 = vcombine.high %v3018_v60, %v3018_v60  ;;  %v3087_v15 = vcombine.high %v3079_v7, %v3079_v7  ;;  %v3335_v60 = vsel %vm899_vm2, %v3319_v9, %v5670_v26 }
 0x817   : > { %v3070_v31 = vcombine.high %v3060_v44, %v3060_v44  ;;  %v3128_v37 = vrot.slane %v3060_v44, %v5125_v0  ;;  %v3132_v32 = vrot.slane %v3068_v24, %v5125_v0  ;;  %v3346_v63 = vmul.f32 %v3330_v5, %v3124_v22  ;;  %v3290_v22 = vpop.permute.xlu0 %3289 }
 0x818   : > { %v3067_v10 = vrot.slane %v3039_v19, %v5113_v41  ;;  %v3069_v54 = vcombine.high %v3053_v34, %v3053_v34  ;;  %v3140_v38 = vrot.slane %v3053_v34, %v5125_v0  ;;  %v3336_v19 = vsel %vm899_vm2, %v3320_v27, %v5676_v8 }
 0x819   : > { %v3347_v50 = vmul.f32 %v3331_v28, %v3128_v37  ;;  %4457 = vmatprep.mubr.msk.f32.mxu1 %vm1929_vm3, %v3346_v63  ;;  %v3348_v23 = vmul.f32 %v3332_v42, %v3132_v32  ;;  %v3136_v49 = vrot.slane %v3070_v31, %v5125_v0  ;;  %v3086_v44 = vrot.slane %v3072_v59, %v5113_v41  ;;  %v3292_v31 = vpop.permute.xlu1 %3291 }
 0x81a   : > { %v3071_v39 = vcombine.high %v3067_v10, %v3067_v10  ;;  %v3144_v20 = vrot.slane %v3067_v10, %v5125_v0  ;;  %v3350_v30 = vmul.f32 %v3334_v36, %v3140_v38  ;;  %v3148_v1 = vrot.slane %v3069_v54, %v5125_v0 }
 0x81b   : > { %4458 = vmatmul.mubr.msk.f32.vlgmr.msra.gmra.mxu1 %vm1929_vm3, %v3347_v50  ;;  %v3349_v18 = vmul.f32 %v3333_v52, %v3136_v49  ;;  %v3109_v24 = vrot.slane %v3087_v15, %v5113_v41  ;;  %v3321_v26 = vsel %vm3313_vm6, %v5554_v40, %v5674_v6  ;;  %v3322_v8 = vsel %vm3313_vm6, %v5578_v57, %v5680_v45  ;;  %v3246_v42 = vpop.permute.xlu0 %3245 }
 0x81c   : > { %4460 = vmatprep.mubr.msk.f32.mxu1 %vm1929_vm3, %v3348_v23  ;;  %v3351_v61 = vmul.f32 %v3335_v60, %v3144_v20  ;;  %v3152_v21 = vrot.slane %v3071_v39, %v5125_v0  ;;  %v3352_v5 = vmul.f32 %v3336_v19, %v3148_v1  ;;  %v3337_v14 = vsel %vm899_vm2, %v3321_v26, %v5678_v46 }
 0x81d   : > { %v3338_v34 = vsel %vm899_vm2, %v3322_v8, %v5684_v43  ;;  %v3088_v37 = vcombine.high %v3086_v44, %v3086_v44  ;;  %v3119_v32 = vcombine.high %v3109_v24, %v3109_v24  ;;  %v3160_v63 = vrot.slane %v3109_v24, %v5125_v0 }
 0x81e   : > { %v3353_v40 = vmul.f32 %v3337_v14, %v3152_v21  ;;  %v3102_v6 = vrot.slane %v3086_v44, %v5113_v41  ;;  %v3164_v57 = vrot.slane %v3117_v55, %v5125_v0  ;;  %v3354_v45 = vmul.f32 %v3338_v34, %v3156_v35 }
 0x81f   : > { %4461 = vmatmul.mubr.msk.f32.gmra.mxu1 %vm1929_vm3, %v3349_v18  ;;  %v3323_v46 = vsel %vm3313_vm6, %v5575_v51, %v5682_v53  ;;  %v3324_v28 = vsel %vm3313_vm6, %v5592_v2, %v5691_v47  ;;  %v3116_v10 = vrot.slane %v3088_v37, %v5113_v41  ;;  %v3168_v51 = vrot.slane %v3119_v32, %v5125_v0  ;;  %v3248_v2 = vpop.permute.xlu1 %3247  ;;  %v3294_v29 = vpop.permute.xlu0 %3293 }
 0x820   : > { %4463 = vmatprep.mubr.msk.f32.mxu1 %vm1929_vm3, %v3350_v30  ;;  %v3339_v43 = vsel %vm899_vm2, %v3323_v46, %v5689_v56  ;;  %v3340_v7 = vsel %vm899_vm2, %v3324_v28, %v5707_v3  ;;  %v3118_v53 = vcombine.high %v3102_v6, %v3102_v6  ;;  %v3172_v23 = vrot.slane %v3102_v6, %v5125_v0 }
 0x821   : > { %v3355_v50 = vmul.f32 %v3339_v43, %v3160_v63  ;;  %v3356_v49 = vmul.f32 %v3340_v7, %v3164_v57  ;;  %v3325_v56 = vsel %vm3313_vm6, %v5589_v33, %v5698_v4  ;;  %v3326_v41 = vsel %vm3313_vm6, %v5606_v12, %v3242_v58 }
 0x822   : > { %v3341_v47 = vsel %vm899_vm2, %v3325_v56, %v5715_v48  ;;  %v3342_v3 = vsel %vm899_vm2, %v3326_v41, %v3290_v22  ;;  %v3120_v54 = vcombine.high %v3116_v10, %v3116_v10  ;;  %v3176_v16 = vrot.slane %v3116_v10, %v5125_v0 }
 0x823   : > { %4464 = vmatmul.mubr.msk.f32.gmra.mxu1 %vm1929_vm3, %v3351_v61  ;;  %v3357_v38 = vmul.f32 %v3341_v47, %v3168_v51  ;;  %v3358_v52 = vmul.f32 %v3342_v3, %v3172_v23  ;;  %v3180_v33 = vrot.slane %v3118_v53, %v5125_v0  ;;  %v3327_v4 = vsel %vm3313_vm6, %v5603_v13, %v3244_v25  ;;  %v3296_v36 = vpop.permute.xlu1 %3295 }
 0x824   : > { %4466 = vmatprep.mubr.msk.f32.mxu1 %vm1929_vm3, %v3352_v5  ;;  %v3343_v48 = vsel %vm899_vm2, %v3327_v4, %v3292_v31  ;;  %v3328_v12 = vsel %vm3313_vm6, %v5635_v11, %v3246_v42  ;;  %v3184_v15 = vrot.slane %v3120_v54, %v5125_v0  ;;  %v3329_v18 = vsel %vm3313_vm6, %v5629_v17, %v3248_v2 }
 0x825   : > { %v3344_v58 = vsel %vm899_vm2, %v3328_v12, %v3294_v29  ;;  %v3359_v59 = vmul.f32 %v3343_v48, %v3176_v16  ;;  %v3345_v13 = vsel %vm899_vm2, %v3329_v18, %v3296_v36 }
 0x826   : > { %v3360_v39 = vmul.f32 %v3344_v58, %v3180_v33  ;;  %v3361_v20 = vmul.f32 %v3345_v13, %v3184_v15 }
 0x827   : > { %4467 = vmatmul.mubr.msk.f32.gmra.mxu1 %vm1929_vm3, %v3353_v40 }
 0x828   : > { %4469 = vmatprep.mubr.msk.f32.mxu1 %vm1929_vm3, %v3354_v45 }
 0x82b   : > { %4470 = vmatmul.mubr.msk.f32.gmra.mxu1 %vm1929_vm3, %v3355_v50 }
 0x82c   : > { %4472 = vmatprep.mubr.msk.f32.mxu1 %vm1929_vm3, %v3356_v49 }
 0x82f   : > { %4473 = vmatmul.mubr.msk.f32.gmra.mxu1 %vm1929_vm3, %v3357_v38 }
 0x830   : > { %4475 = vmatprep.mubr.msk.f32.mxu1 %vm1929_vm3, %v3358_v52 }
 0x833   : > { %4476 = vmatmul.mubr.msk.f32.gmra.mxu1 %vm1929_vm3, %v3359_v59 }
 0x834   : > { %4478 = vmatprep.mubr.msk.f32.mxu1 %vm1929_vm3, %v3360_v39 }
 0x837   : > { %4479 = vmatmul.mubr.msk.f32.gmra.mxu1 %vm1929_vm3, %v3361_v20 }
 0x8db   : > { %v4459_v11 = vpop.f32.mrf.mxu1 }
 0x8dd   : > { %v3482_v62 = vpop.f32.mrf.mxu1 }
 0x8de   : > { %3561 = vxpose.xlu0.b32.start [1/16] (narrow) %v3482_v62, 8 }
 0x8df   : > { %v4462_v30 = vpop.f32.mrf.mxu1 }
 0x8e1   : > { %v3492_v1 = vpop.f32.mrf.mxu1 }
 0x8e2   : > { %3562 = vxpose.xlu0.b32.cont [2/16] (narrow) %v4459_v11, 8 }
 0x8e3   : > { %v4465_v0 = vpop.f32.mrf.mxu1 }
 0x8e5   : > { %v3502_v9 = vpop.f32.mrf.mxu1 }
 0x8e6   : > { %3563 = vxpose.xlu0.b32.cont [3/16] (narrow) %v3492_v1, 8 }
 0x8e7   : > { %v4468_v17 = vpop.f32.mrf.mxu1 }
 0x8e9   : > { %v3512_v27 = vpop.f32.mrf.mxu1 }
 0x8ea   : > { %3564 = vxpose.xlu0.b32.cont [4/16] (narrow) %v4462_v30, 8 }
 0x8eb   : > { %v4471_v25 = vpop.f32.mrf.mxu1 }
 0x8ed   : > { %v3522_v60 = vpop.f32.mrf.mxu1 }
 0x8ee   : > { %3565 = vxpose.xlu0.b32.cont [5/16] (narrow) %v3502_v9, 8 }
 0x8ef   : > { %v4474_v19 = vpop.f32.mrf.mxu1 }
 0x8f1   : > { %v3532_v44 = vpop.f32.mrf.mxu1 }
 0x8f2   : > { %3566 = vxpose.xlu0.b32.cont [6/16] (narrow) %v4465_v0, 8 }
 0x8f3   : > { %v4477_v24 = vpop.f32.mrf.mxu1 }
 0x8f5   : > { %v3542_v61 = vpop.f32.mrf.mxu1 }
 0x8f6   : > { %3567 = vxpose.xlu0.b32.cont [7/16] (narrow) %v3512_v27, 8 }
 0x8f7   : > { %v4480_v21 = vpop.f32.mrf.mxu1 }
 0x8f9   : > { %v3552_v22 = vpop.f32.mrf.mxu1 }
 0x8fa   : > { %3568 = vxpose.xlu0.b32.cont [8/16] (narrow) %v4468_v17, 8 }
 0x8fe   : > { %3569 = vxpose.xlu0.b32.cont [9/16] (narrow) %v3522_v60, 8 }
 0x902   : > { %3570 = vxpose.xlu0.b32.cont [10/16] (narrow) %v4471_v25, 8 }
 0x906   : > { %3571 = vxpose.xlu0.b32.cont [11/16] (narrow) %v3532_v44, 8 }
 0x90a   : > { %3572 = vxpose.xlu0.b32.cont [12/16] (narrow) %v4474_v19, 8 }
 0x90e   : > { %3573 = vxpose.xlu0.b32.cont [13/16] (narrow) %v3542_v61, 8 }
 0x912   : > { %3574 = vxpose.xlu0.b32.cont [14/16] (narrow) %v4477_v24, 8 }
 0x916   : > { %3575 = vxpose.xlu0.b32.cont [15/16] (narrow) %v3552_v22, 8 }
 0x91a   : > { %3576 = vxpose.xlu0.b32.end [16/16] (narrow) %v4480_v21, 8 }
 0x95a   : > { %v3577_v55 = vpop.trf.xlu0 }
 0x95b   : > { %4559 = vtanh.f32 %v3577_v55 }
 0x968   : > { %v4560_v35 = vpop.eup %4559 }
 0x969   : > { %v3594_v5 = vmul.f32 10.0, %v4560_v35 }
 0x96b   : > { %v3595_v26 = vsel %vm2531_vm5, %v3594_v5, -inf }
 0x96c   : > { %v3596_v8 = vrot.slane %v3595_v26, 4 }
 0x96e   : > { %v3597_v14 = vmax.f32 %v3595_v26, %v3596_v8 }
 0x970   : > { %v3598_v34 = vrot.slane %v3597_v14, 2 }
 0x972   : > { %v3599_v31 = vmax.f32 %v3597_v14, %v3598_v34 }
 0x974   : > { %v3600_v37 = vrot.slane %v3599_v31, 1 }
 0x976   : > { %v3601_v32 = vmax.f32 %v3599_v31, %v3600_v37 }
 0x978   : > { %v3602_v63 = vsub.f32 %v3594_v5, %v3601_v32 }
 0x97a   : > { %v3603_v40 = vmul.f32 1.442695, %v3602_v63 }
 0x97c   : > { %4561 = vpow2.f32 %v3603_v40 }
 0x989   : > { %v4562_v6 = vpop.eup %4561 }
 0x98a   : > { %v3605_v57 = vsel %vm2531_vm5, %v4562_v6, 0.0 }
 0x98b   : > { %v3606_v45 = vrot.slane %v3605_v57, 4 }
 0x98d   : > { %v3607_v46 = vadd.f32 %v3606_v45, %v3605_v57 }
 0x98f   : > { %v3608_v43 = vrot.slane %v3607_v46, 2 }
 0x991   : > { %v3609_v28 = vadd.f32 %v3608_v43, %v3607_v46 }
 0x993   : > { %v3610_v42 = vrot.slane %v3609_v28, 1 }
 0x995   : > { %v3611_v7 = vadd.f32 %v3610_v42, %v3609_v28 }
 0x997   : > { %4563 = vrcp.f32 %v3611_v7 }
 0x9a4   : > { %v4564_v10 = vpop.eup %4563 }
 0x9a5   : > { %v3613_v50 = vmul.f32 %v4564_v10, %v4562_v6 }
 0x9a7   : > { %3614 = vst [vmem:[%s623_s21] sm:$0x7] %v3613_v50 }
 0x9a8   : > { %4579 = shalt.err (!%p4576_p3)
}
 0x9a9   : > { %s4580_s28 = scalar_lea.hbm %s3627_s8, 64  ;;  %s4584_s21 = scalar_lea.hbm %s5861_s20, 128 }
 0x9aa   : > { %p4581_p4 = scmp.ne.s32.totalorder %s3627_s8, %s4580_s28  ;;  %p4585_p9 = scmp.lt.s32.totalorder %s3627_s8, %s5861_s20 }
 0x9ab   : > { %p4586_p10 = scmp.lt.s32.totalorder %s4584_s21, %s4580_s28 }
 0x9ac   : > { %p4582_p7 = pnand %p4581_p4, %p4775_p5 }
 0x9ad   : > { %p4587_p11 = por %p4586_p10, %p4585_p9 }
 0x9ae   : > { %p4583_p8 = pneg %p4582_p7 }
 0x9b0   : > { %p4588_p12 = pnand %p4587_p11, %p4583_p8 }
 0x9b2   : > { %4591 = shalt.err (!%p4588_p12)
}
 0x9b3   : > { %4481 = dma.vmem_to_hbm [thread:$0]  (%p4775_p5), %s3630_s26, 64, %s3627_s8, %s3616_s5  }
 0x9b4 PF: > { %p4487_p13 = scmp.ge.s32.totalorder %s4626_s24, 2  ;;  %s3641_s6 = sand.u32 1, %s4614_s1  }
 0x9b5   : > { %s3642_s7 = scalar_lea.sflag [#allocation3], %s3641_s6 }
 0x9b6   : > { %p4484_p0 = pnand %p4487_p13, %p4779_p6 }
 0x9b8   : > { %p4485_p1 = pneg %p4484_p0 }
 0x9ba   : > { %4609 = dma.done.wait (%p4485_p1), %s3642_s7, 64  }
 0x9bb   : > { %4611 = vsyncadd (%p4485_p1), %s3642_s7, 4294967232  ;;  %s5900_s9 = sld [smem:[#allocation5_spill]]  ;;  %p30_p2 = scmp.ge.s32.totalorder %s4762_s3, 4  }
 0x9bc   : > { %s5901_s23 = sld [smem:[#allocation6_spill]]  ;;  %s5902_s1 = smov %s4618_s22 }
 0x9bd   : > { %s5904_s24 = smov %s4762_s3  ;;  %32 = sbr.rel (!%p30_p2) target bundleno = 13 (0xd), region = 135 }
 0x9c1   : > { %s5903_s22 = smov %s5900_s9 }
 0x9c2   :  { %3647 = vsyncpa [#allocation3], 1 }
 0x9c3   :  { %3649 = vsyncpa [#allocation3 + $0x1], 1 }

</bundles_post_ra>
